<compile_context>
chip_gen: v7x
topology: tpu7x:2x2x1
jax: 0.10.0
libtpu: 0.0.40
codegen_flags: <defaults>
</compile_context>

<pallas_src>
import jax
import jax.numpy as jnp
from jax.experimental import pallas as pl
from jax.experimental.pallas import tpu as pltpu


def _round_up(n, m):
    return ((n + m - 1) // m) * m


def _gru_gate_kernel(x_ref, y_ref, wcat_ref, bz_ref, ucat_ref, ug_ref, o_ref):
    """One row-tile of GRUGate.

    x_ref, y_ref, o_ref : [tm, d]    (d = lane-padded d_model, multiple of 128)
    wcat_ref            : [d, 3*d]   ([wz | wr | wg], stored as [in, out])
    bz_ref              : [1, d]
    ucat_ref            : [d, 2*d]   ([uz | ur])
    ug_ref              : [d, d]
    """
    x = x_ref[...].astype(jnp.float32)   # "x" (residual stream) in GRUGate
    y = y_ref[...].astype(jnp.float32)   # "y" (candidate) in GRUGate
    d = x.shape[-1]

    # Two wide MXU matmuls instead of five narrow d x d ones.
    yw = jnp.dot(y, wcat_ref[...], preferred_element_type=jnp.float32)  # [tm, 3d]
    xu = jnp.dot(x, ucat_ref[...], preferred_element_type=jnp.float32)  # [tm, 2d]

    bz = bz_ref[...]                                                    # [1, d]
    z = jax.nn.sigmoid(yw[:, 0 * d:1 * d] + bz + xu[:, 0 * d:1 * d])
    r = jax.nn.sigmoid(yw[:, 1 * d:2 * d] + xu[:, 1 * d:2 * d])
    h_hat = jnp.tanh(
        yw[:, 2 * d:3 * d]
        + jnp.dot(r * x, ug_ref[...], preferred_element_type=jnp.float32)
    )
    o_ref[...] = ((1.0 - z) * x + z * h_hat).astype(o_ref.dtype)


def _gru_gate_call(x, y, params, *, tm, single_buffer_weights):
    orig_shape = x.shape
    d_model = orig_shape[-1]
    x2d = x.reshape(-1, d_model)
    y2d = y.reshape(-1, d_model)
    n = x2d.shape[0]

    # Lane-dense feature axis (multiple of 128) and sublane-aligned row tile.
    d_pad = _round_up(d_model, 128)
    tm = max(8, min(tm, _round_up(n, 8)))
    n_pad = _round_up(n, tm)

    def pad2d(a, rows, cols):
        return jnp.pad(a, ((0, rows - a.shape[0]), (0, cols - a.shape[1])))

    xp = pad2d(x2d, n_pad, d_pad)
    yp = pad2d(y2d, n_pad, d_pad)

    # Weights are stored pre-transposed as [in, out]; pad each block before
    # concatenating so in-kernel slices land on d_pad boundaries.
    w_cat = jnp.concatenate(
        [pad2d(params["wz"], d_pad, d_pad),
         pad2d(params["wr"], d_pad, d_pad),
         pad2d(params["wg"], d_pad, d_pad)], axis=1)              # [d, 3d]
    u_cat = jnp.concatenate(
        [pad2d(params["uz"], d_pad, d_pad),
         pad2d(params["ur"], d_pad, d_pad)], axis=1)              # [d, 2d]
    ug = pad2d(params["ug"], d_pad, d_pad)                        # [d, d]
    bz = jnp.pad(params["bz"].reshape(1, -1),
                 ((0, 0), (0, d_pad - d_model)))                  # [1, d]

    grid = (n_pad // tm,)

    weight_bytes = 4 * (w_cat.size + u_cat.size + ug.size + bz.size)
    act_tile_bytes = 4 * tm * d_pad
    vmem_needed = (weight_bytes * (1 if single_buffer_weights else 2)
                   + 3 * 2 * act_tile_bytes        # x / y / out double-buffered
                   + 8 * act_tile_bytes)           # yw, xu, gate temporaries
    vmem_limit = int(min(max(vmem_needed + (8 << 20), 32 << 20), 100 << 20))

    cost = pl.CostEstimate(
        flops=int(2 * n_pad * d_pad * (6 * d_pad) + 10 * n_pad * d_pad),
        transcendentals=int(3 * n_pad * d_pad),
        bytes_accessed=int(4 * 3 * n_pad * d_pad + weight_bytes),
    )

    def row_spec():
        return pl.BlockSpec((tm, d_pad), lambda i: (i, 0))

    def const_spec(shape):
        if single_buffer_weights:
            # Loop-invariant operands: fetched once, no need for 2 buffers.
            return pl.BlockSpec(shape, lambda i: (0,) * len(shape),
                                pipeline_mode=pl.Buffered(1))
        return pl.BlockSpec(shape, lambda i: (0,) * len(shape))

    out = pl.pallas_call(
        _gru_gate_kernel,
        out_shape=jax.ShapeDtypeStruct((n_pad, d_pad), x.dtype),
        grid_spec=pltpu.PrefetchScalarGridSpec(
            num_scalar_prefetch=0,
            grid=grid,
            in_specs=[
                row_spec(),                          # x
                row_spec(),                          # y
                const_spec((d_pad, 3 * d_pad)),      # W_cat = [wz | wr | wg]
                const_spec((1, d_pad)),              # bz
                const_spec((d_pad, 2 * d_pad)),      # U_cat = [uz | ur]
                const_spec((d_pad, d_pad)),          # ug
            ],
            out_specs=row_spec(),
        ),
        compiler_params=pltpu.CompilerParams(
            dimension_semantics=("parallel",),
            vmem_limit_bytes=vmem_limit,
        ),
        cost_estimate=cost,
    )(xp, yp, w_cat, bz, u_cat, ug)

    return out[:n, :d_model].reshape(orig_shape)


def gru_gate(x, y, params, *, tm=256):
    """GRUGate forward. x, y: [..., d_model]. Use tm=128 on v5e."""
    try:
        return _gru_gate_call(x, y, params, tm=tm, single_buffer_weights=True)
    except Exception:
        # Fallback if Buffered(1) pipelining is unsupported on this jax build.
        return _gru_gate_call(x, y, params, tm=tm, single_buffer_weights=False)


def init_params(key, d_model):
    """Deterministic synthetic init. Weights stored [in, out] (pre-transposed)."""
    ks = jax.random.split(key, 6)
    scale = 0.1
    return {
        "wz": scale * jax.random.normal(ks[0], (d_model, d_model), jnp.float32),
        "bz": jnp.full((d_model,), -2.0, jnp.float32),   # linear_w_z.bias.fill_(-2)
        "uz": scale * jax.random.normal(ks[1], (d_model, d_model), jnp.float32),
        "wr": scale * jax.random.normal(ks[2], (d_model, d_model), jnp.float32),
        "ur": scale * jax.random.normal(ks[3], (d_model, d_model), jnp.float32),
        "wg": scale * jax.random.normal(ks[4], (d_model, d_model), jnp.float32),
        "ug": scale * jax.random.normal(ks[5], (d_model, d_model), jnp.float32),
    }


def _reference(x, y, p):
    """Pure-JAX GRUGate reference for correctness check."""
    z = jax.nn.sigmoid(y @ p["wz"] + p["bz"] + x @ p["uz"])
    r = jax.nn.sigmoid(y @ p["wr"] + x @ p["ur"])
    h_hat = jnp.tanh(y @ p["wg"] + (r * x) @ p["ug"])
    return (1.0 - z) * x + z * h_hat


if __name__ == "__main__":
    B, S, d_model = 2, 8, 32
    key = jax.random.PRNGKey(0)
    kx, ky, kp = jax.random.split(key, 3)
    x = jax.random.normal(kx, (B, S, d_model), jnp.float32)
    y = jax.random.normal(ky, (B, S, d_model), jnp.float32)
    params = init_params(kp, d_model)

    out = gru_gate(x, y, params)
    out = jax.block_until_ready(out)

    ref = _reference(x, y, params)
    assert out.shape == (B, S, d_model)
    assert jnp.allclose(out, ref, atol=1e-5, rtol=1e-5), "mismatch vs reference"
    print("KERNEL_OK")
</pallas_src>

<mosaic_0001>
module attributes {stable_mosaic.version = 11 : i64} {
  func.func @_gru_gate_kernel(%arg0: i32, %arg1: memref<16x128xf32, #tpu.memory_space<vmem>>, %arg2: memref<16x128xf32, #tpu.memory_space<vmem>>, %arg3: memref<128x384xf32, #tpu.memory_space<vmem>>, %arg4: memref<1x128xf32, #tpu.memory_space<vmem>>, %arg5: memref<128x256xf32, #tpu.memory_space<vmem>>, %arg6: memref<128x128xf32, #tpu.memory_space<vmem>>, %arg7: memref<16x128xf32, #tpu.memory_space<vmem>>) attributes {dimension_semantics = [#tpu.dimension_semantics<parallel>], iteration_bounds = array<i64: 1>, scalar_prefetch = 0 : i64, scratch_operands = 0 : i64, tpu.core_type = #tpu.core_type<tc>, window_params = [{transform_indices = @transform_0, window_bounds = array<i64: 16, 128>}, {transform_indices = @transform_1, window_bounds = array<i64: 16, 128>}, {pipeline_mode = #tpu.pipeline_mode<synchronous>, transform_indices = @transform_2, window_bounds = array<i64: 128, 384>}, {pipeline_mode = #tpu.pipeline_mode<synchronous>, transform_indices = @transform_3, window_bounds = array<i64: 1, 128>}, {pipeline_mode = #tpu.pipeline_mode<synchronous>, transform_indices = @transform_4, window_bounds = array<i64: 128, 256>}, {pipeline_mode = #tpu.pipeline_mode<synchronous>, transform_indices = @transform_5, window_bounds = array<i64: 128, 128>}, {transform_indices = @transform_6, window_bounds = array<i64: 16, 128>}]} {
    %c0 = arith.constant 0 : index
    %c0_0 = arith.constant 0 : index
    %0 = vector.load %arg1[%c0, %c0_0] : memref<16x128xf32, #tpu.memory_space<vmem>>, vector<16x128xf32>
    %c0_1 = arith.constant 0 : index
    %c0_2 = arith.constant 0 : index
    %1 = vector.load %arg2[%c0_1, %c0_2] : memref<16x128xf32, #tpu.memory_space<vmem>>, vector<16x128xf32>
    %c0_3 = arith.constant 0 : index
    %c0_4 = arith.constant 0 : index
    %2 = vector.load %arg3[%c0_3, %c0_4] : memref<128x384xf32, #tpu.memory_space<vmem>>, vector<128x384xf32>
    %cst = arith.constant dense<0.000000e+00> : vector<16x384xf32>
    %3 = tpu.matmul %1, %2, %cst {dimension_numbers = #tpu.dot_dimension_numbers<[1], [0], [0], [1], [0, 0, 1, 1], [], []>} : vector<16x128xf32>, vector<128x384xf32>, vector<16x384xf32> -> vector<16x384xf32>
    %c0_5 = arith.constant 0 : index
    %c0_6 = arith.constant 0 : index
    %4 = vector.load %arg5[%c0_5, %c0_6] : memref<128x256xf32, #tpu.memory_space<vmem>>, vector<128x256xf32>
    %cst_7 = arith.constant dense<0.000000e+00> : vector<16x256xf32>
    %5 = tpu.matmul %0, %4, %cst_7 {dimension_numbers = #tpu.dot_dimension_numbers<[1], [0], [0], [1], [0, 0, 1, 1], [], []>} : vector<16x128xf32>, vector<128x256xf32>, vector<16x256xf32> -> vector<16x256xf32>
    %c0_8 = arith.constant 0 : index
    %c0_9 = arith.constant 0 : index
    %6 = vector.load %arg4[%c0_8, %c0_9] : memref<1x128xf32, #tpu.memory_space<vmem>>, vector<1x128xf32>
    %7 = vector.extract_strided_slice %3 {offsets = [0, 0], sizes = [16, 128], strides = [1, 1]} : vector<16x384xf32> to vector<16x128xf32>
    %8 = vector.broadcast %6 : vector<1x128xf32> to vector<16x128xf32>
    %9 = arith.addf %7, %8 : vector<16x128xf32>
    %10 = vector.extract_strided_slice %5 {offsets = [0, 0], sizes = [16, 128], strides = [1, 1]} : vector<16x256xf32> to vector<16x128xf32>
    %11 = arith.addf %9, %10 : vector<16x128xf32>
    %12 = arith.negf %11 : vector<16x128xf32>
    %13 = math.exp %12 : vector<16x128xf32>
    %cst_10 = arith.constant 1.000000e+00 : f32
    %14 = vector.broadcast %cst_10 : f32 to vector<16x128xf32>
    %15 = arith.addf %14, %13 : vector<16x128xf32>
    %16 = arith.divf %14, %15 : vector<16x128xf32>
    %17 = vector.extract_strided_slice %3 {offsets = [0, 128], sizes = [16, 128], strides = [1, 1]} : vector<16x384xf32> to vector<16x128xf32>
    %18 = vector.extract_strided_slice %5 {offsets = [0, 128], sizes = [16, 128], strides = [1, 1]} : vector<16x256xf32> to vector<16x128xf32>
    %19 = arith.addf %17, %18 : vector<16x128xf32>
    %20 = arith.negf %19 : vector<16x128xf32>
    %21 = math.exp %20 : vector<16x128xf32>
    %cst_11 = arith.constant 1.000000e+00 : f32
    %22 = vector.broadcast %cst_11 : f32 to vector<16x128xf32>
    %23 = arith.addf %22, %21 : vector<16x128xf32>
    %24 = arith.divf %22, %23 : vector<16x128xf32>
    %25 = vector.extract_strided_slice %3 {offsets = [0, 256], sizes = [16, 128], strides = [1, 1]} : vector<16x384xf32> to vector<16x128xf32>
    %26 = arith.mulf %24, %0 : vector<16x128xf32>
    %c0_12 = arith.constant 0 : index
    %c0_13 = arith.constant 0 : index
    %27 = vector.load %arg6[%c0_12, %c0_13] : memref<128x128xf32, #tpu.memory_space<vmem>>, vector<128x128xf32>
    %cst_14 = arith.constant dense<0.000000e+00> : vector<16x128xf32>
    %28 = tpu.matmul %26, %27, %cst_14 {dimension_numbers = #tpu.dot_dimension_numbers<[1], [0], [0], [1], [0, 0, 1, 1], [], []>} : vector<16x128xf32>, vector<128x128xf32>, vector<16x128xf32> -> vector<16x128xf32>
    %29 = arith.addf %25, %28 : vector<16x128xf32>
    %30 = math.tanh %29 : vector<16x128xf32>
    %cst_15 = arith.constant 1.000000e+00 : f32
    %31 = vector.broadcast %cst_15 : f32 to vector<16x128xf32>
    %32 = arith.subf %31, %16 : vector<16x128xf32>
    %33 = arith.mulf %32, %0 : vector<16x128xf32>
    %34 = arith.mulf %16, %30 : vector<16x128xf32>
    %35 = arith.addf %33, %34 : vector<16x128xf32>
    %c0_16 = arith.constant 0 : index
    %c0_17 = arith.constant 0 : index
    %36 = vector.load %arg7[%c0_16, %c0_17] : memref<16x128xf32, #tpu.memory_space<vmem>>, vector<16x128xf32>
    tpu.vector_store %arg7[%c0_16, %c0_17], %35 {strides = array<i32>} : memref<16x128xf32, #tpu.memory_space<vmem>>, vector<16x128xf32>,
    return
  }
  func.func @transform_0(%arg0: i32) -> (i32, i32) {
    %c0_i32 = arith.constant 0 : i32
    %c0_i32_0 = arith.constant 0 : i32
    return %arg0, %c0_i32 : i32, i32
  }
  func.func @transform_1(%arg0: i32) -> (i32, i32) {
    %c0_i32 = arith.constant 0 : i32
    %c0_i32_0 = arith.constant 0 : i32
    return %arg0, %c0_i32 : i32, i32
  }
  func.func @transform_2(%arg0: i32) -> (i32, i32) {
    %c0_i32 = arith.constant 0 : i32
    %c0_i32_0 = arith.constant 0 : i32
    %c0_i32_1 = arith.constant 0 : i32
    return %c0_i32, %c0_i32_0 : i32, i32
  }
  func.func @transform_3(%arg0: i32) -> (i32, i32) {
    %c0_i32 = arith.constant 0 : i32
    %c0_i32_0 = arith.constant 0 : i32
    %c0_i32_1 = arith.constant 0 : i32
    return %c0_i32, %c0_i32_0 : i32, i32
  }
  func.func @transform_4(%arg0: i32) -> (i32, i32) {
    %c0_i32 = arith.constant 0 : i32
    %c0_i32_0 = arith.constant 0 : i32
    %c0_i32_1 = arith.constant 0 : i32
    return %c0_i32, %c0_i32_0 : i32, i32
  }
  func.func @transform_5(%arg0: i32) -> (i32, i32) {
    %c0_i32 = arith.constant 0 : i32
    %c0_i32_0 = arith.constant 0 : i32
    %c0_i32_1 = arith.constant 0 : i32
    return %c0_i32, %c0_i32_0 : i32, i32
  }
  func.func @transform_6(%arg0: i32) -> (i32, i32) {
    %c0_i32 = arith.constant 0 : i32
    %c0_i32_0 = arith.constant 0 : i32
    return %arg0, %c0_i32 : i32, i32
  }
}

module attributes {stable_mosaic.version = 11 : i64} {
  func.func @_gru_gate_kernel(%arg0: i32, %arg1: memref<16x128xf32, #tpu.memory_space<vmem>>, %arg2: memref<16x128xf32, #tpu.memory_space<vmem>>, %arg3: memref<128x384xf32, #tpu.memory_space<vmem>>, %arg4: memref<1x128xf32, #tpu.memory_space<vmem>>, %arg5: memref<128x256xf32, #tpu.memory_space<vmem>>, %arg6: memref<128x128xf32, #tpu.memory_space<vmem>>, %arg7: memref<16x128xf32, #tpu.memory_space<vmem>>) attributes {dimension_semantics = [#tpu.dimension_semantics<parallel>], iteration_bounds = array<i64: 1>, scalar_prefetch = 0 : i64, scratch_operands = 0 : i64, tpu.core_type = #tpu.core_type<tc>, window_params = [{transform_indices = @transform_0, window_bounds = array<i64: 16, 128>}, {transform_indices = @transform_1, window_bounds = array<i64: 16, 128>}, {pipeline_mode = #tpu.pipeline_mode<synchronous>, transform_indices = @transform_2, window_bounds = array<i64: 128, 384>}, {pipeline_mode = #tpu.pipeline_mode<synchronous>, transform_indices = @transform_3, window_bounds = array<i64: 1, 128>}, {pipeline_mode = #tpu.pipeline_mode<synchronous>, transform_indices = @transform_4, window_bounds = array<i64: 128, 256>}, {pipeline_mode = #tpu.pipeline_mode<synchronous>, transform_indices = @transform_5, window_bounds = array<i64: 128, 128>}, {transform_indices = @transform_6, window_bounds = array<i64: 16, 128>}]} {
    %c0 = arith.constant 0 : index
    %c0_0 = arith.constant 0 : index
    %0 = vector.load %arg1[%c0, %c0_0] : memref<16x128xf32, #tpu.memory_space<vmem>>, vector<16x128xf32>
    %c0_1 = arith.constant 0 : index
    %c0_2 = arith.constant 0 : index
    %1 = vector.load %arg2[%c0_1, %c0_2] : memref<16x128xf32, #tpu.memory_space<vmem>>, vector<16x128xf32>
    %c0_3 = arith.constant 0 : index
    %c0_4 = arith.constant 0 : index
    %2 = vector.load %arg3[%c0_3, %c0_4] : memref<128x384xf32, #tpu.memory_space<vmem>>, vector<128x384xf32>
    %cst = arith.constant dense<0.000000e+00> : vector<16x384xf32>
    %3 = tpu.matmul %1, %2, %cst {dimension_numbers = #tpu.dot_dimension_numbers<[1], [0], [0], [1], [0, 0, 1, 1], [], []>} : vector<16x128xf32>, vector<128x384xf32>, vector<16x384xf32> -> vector<16x384xf32>
    %c0_5 = arith.constant 0 : index
    %c0_6 = arith.constant 0 : index
    %4 = vector.load %arg5[%c0_5, %c0_6] : memref<128x256xf32, #tpu.memory_space<vmem>>, vector<128x256xf32>
    %cst_7 = arith.constant dense<0.000000e+00> : vector<16x256xf32>
    %5 = tpu.matmul %0, %4, %cst_7 {dimension_numbers = #tpu.dot_dimension_numbers<[1], [0], [0], [1], [0, 0, 1, 1], [], []>} : vector<16x128xf32>, vector<128x256xf32>, vector<16x256xf32> -> vector<16x256xf32>
    %c0_8 = arith.constant 0 : index
    %c0_9 = arith.constant 0 : index
    %6 = vector.load %arg4[%c0_8, %c0_9] : memref<1x128xf32, #tpu.memory_space<vmem>>, vector<1x128xf32>
    %7 = vector.extract_strided_slice %3 {offsets = [0, 0], sizes = [16, 128], strides = [1, 1]} : vector<16x384xf32> to vector<16x128xf32>
    %8 = vector.broadcast %6 : vector<1x128xf32> to vector<16x128xf32>
    %9 = arith.addf %7, %8 : vector<16x128xf32>
    %10 = vector.extract_strided_slice %5 {offsets = [0, 0], sizes = [16, 128], strides = [1, 1]} : vector<16x256xf32> to vector<16x128xf32>
    %11 = arith.addf %9, %10 : vector<16x128xf32>
    %12 = arith.negf %11 : vector<16x128xf32>
    %13 = math.exp %12 : vector<16x128xf32>
    %cst_10 = arith.constant 1.000000e+00 : f32
    %14 = vector.broadcast %cst_10 : f32 to vector<16x128xf32>
    %15 = arith.addf %14, %13 : vector<16x128xf32>
    %16 = arith.divf %14, %15 : vector<16x128xf32>
    %17 = vector.extract_strided_slice %3 {offsets = [0, 128], sizes = [16, 128], strides = [1, 1]} : vector<16x384xf32> to vector<16x128xf32>
    %18 = vector.extract_strided_slice %5 {offsets = [0, 128], sizes = [16, 128], strides = [1, 1]} : vector<16x256xf32> to vector<16x128xf32>
    %19 = arith.addf %17, %18 : vector<16x128xf32>
    %20 = arith.negf %19 : vector<16x128xf32>
    %21 = math.exp %20 : vector<16x128xf32>
    %cst_11 = arith.constant 1.000000e+00 : f32
    %22 = vector.broadcast %cst_11 : f32 to vector<16x128xf32>
    %23 = arith.addf %22, %21 : vector<16x128xf32>
    %24 = arith.divf %22, %23 : vector<16x128xf32>
    %25 = vector.extract_strided_slice %3 {offsets = [0, 256], sizes = [16, 128], strides = [1, 1]} : vector<16x384xf32> to vector<16x128xf32>
    %26 = arith.mulf %24, %0 : vector<16x128xf32>
    %c0_12 = arith.constant 0 : index
    %c0_13 = arith.constant 0 : index
    %27 = vector.load %arg6[%c0_12, %c0_13] : memref<128x128xf32, #tpu.memory_space<vmem>>, vector<128x128xf32>
    %cst_14 = arith.constant dense<0.000000e+00> : vector<16x128xf32>
    %28 = tpu.matmul %26, %27, %cst_14 {dimension_numbers = #tpu.dot_dimension_numbers<[1], [0], [0], [1], [0, 0, 1, 1], [], []>} : vector<16x128xf32>, vector<128x128xf32>, vector<16x128xf32> -> vector<16x128xf32>
    %29 = arith.addf %25, %28 : vector<16x128xf32>
    %30 = math.tanh %29 : vector<16x128xf32>
    %cst_15 = arith.constant 1.000000e+00 : f32
    %31 = vector.broadcast %cst_15 : f32 to vector<16x128xf32>
    %32 = arith.subf %31, %16 : vector<16x128xf32>
    %33 = arith.mulf %32, %0 : vector<16x128xf32>
    %34 = arith.mulf %16, %30 : vector<16x128xf32>
    %35 = arith.addf %33, %34 : vector<16x128xf32>
    %c0_16 = arith.constant 0 : index
    %c0_17 = arith.constant 0 : index
    %36 = vector.load %arg7[%c0_16, %c0_17] : memref<16x128xf32, #tpu.memory_space<vmem>>, vector<16x128xf32>
    tpu.vector_store %arg7[%c0_16, %c0_17], %35 {strides = array<i32>} : memref<16x128xf32, #tpu.memory_space<vmem>>, vector<16x128xf32>,
    return
  }
  func.func @transform_0(%arg0: i32) -> (i32, i32) {
    %c0_i32 = arith.constant 0 : i32
    %c0_i32_0 = arith.constant 0 : i32
    return %arg0, %c0_i32 : i32, i32
  }
  func.func @transform_1(%arg0: i32) -> (i32, i32) {
    %c0_i32 = arith.constant 0 : i32
    %c0_i32_0 = arith.constant 0 : i32
    return %arg0, %c0_i32 : i32, i32
  }
  func.func @transform_2(%arg0: i32) -> (i32, i32) {
    %c0_i32 = arith.constant 0 : i32
    %c0_i32_0 = arith.constant 0 : i32
    %c0_i32_1 = arith.constant 0 : i32
    return %c0_i32, %c0_i32_0 : i32, i32
  }
  func.func @transform_3(%arg0: i32) -> (i32, i32) {
    %c0_i32 = arith.constant 0 : i32
    %c0_i32_0 = arith.constant 0 : i32
    %c0_i32_1 = arith.constant 0 : i32
    return %c0_i32, %c0_i32_0 : i32, i32
  }
  func.func @transform_4(%arg0: i32) -> (i32, i32) {
    %c0_i32 = arith.constant 0 : i32
    %c0_i32_0 = arith.constant 0 : i32
    %c0_i32_1 = arith.constant 0 : i32
    return %c0_i32, %c0_i32_0 : i32, i32
  }
  func.func @transform_5(%arg0: i32) -> (i32, i32) {
    %c0_i32 = arith.constant 0 : i32
    %c0_i32_0 = arith.constant 0 : i32
    %c0_i32_1 = arith.constant 0 : i32
    return %c0_i32, %c0_i32_0 : i32, i32
  }
  func.func @transform_6(%arg0: i32) -> (i32, i32) {
    %c0_i32 = arith.constant 0 : i32
    %c0_i32_0 = arith.constant 0 : i32
    return %arg0, %c0_i32 : i32, i32
  }
}

</mosaic_0001>

<bundles_post_ra>
// kernel: tpu_custom_call.1
= control target key start
LH: loop header
LB: loop body
LE: loop exit
PB: predicated region body
PF: predicated region fallthrough
CT: control target
= control target key end

     0   :  { %11 = vsyncpa [#allocation3], 0  ;;  %s1149_s0 = inlined_call_operand.hbm [shape: f32[16,128], index: 0, kind: input, shape index: {}]   ;;  %s1150_s1 = inlined_call_operand.hbm [shape: f32[16,128], index: 1, kind: input, shape index: {}]   ;;  %s1151_s2 = inlined_call_operand.hbm [shape: f32[128,384], index: 2, kind: input, shape index: {}]   ;;  %s1152_s3 = inlined_call_operand.vmem [shape: f32[1,128], index: 3, kind: input, shape index: {}]   ;;  %s1153_s4 = inlined_call_operand.hbm [shape: f32[128,256], index: 4, kind: input, shape index: {}]   ;;  %s1154_s5 = inlined_call_operand.hbm [shape: f32[128,128], index: 5, kind: input, shape index: {}]   ;;  %s1155_s6 = inlined_call_operand.hbm [shape: f32[16,128], index: 6, kind: output, shape index: {}]  }
   0x1   :  { %12 = vsyncpa [#allocation6], 0 }
   0x2   :  { %13 = vsyncpa [#allocation9], 0 }
   0x3   :  { %14 = vsyncpa [#allocation4], 0  ;;  %s982_s21 = smov [#allocation5]   ;;  %s983_s23 = smov [#allocation8]  }
   0x4   :  { %s32_s22 = sshll.u32 %s982_s21, 4  ;;  %s58_s24 = sshll.u32 %s983_s23, 4  ;;  %s33_s22 = int_to_ptr.vmem [resolvable:$true] %s32_s22  ;;  %s1030_s24 = int_to_ptr.vmem [resolvable:$true] %s58_s24 }
   0x5   :  { %s842_s27 = scalar_lea.hbm %s1150_s1, 256 }
   0x6   :  { %p843_p0 = scmp.ne.s32.totalorder %s1150_s1, %s842_s27  ;;  %p846_p1 = scmp.lt.u32.totalorder %s842_s27, %s1150_s1 }
   0x8   :  { %p848_p2 = pnand %p846_p1, %p843_p0 }
   0xa   :  { %851 = shalt.err (!%p848_p2)
}
   0xb   :  { %s852_s8 = scalar_lea.vmem %s33_s22, 256  ;;  %p857_p4 = scmp.lt.s32.totalorder %s33_s22, %s33_s22 }
   0xc   :  { %p853_p3 = scmp.ne.s32.totalorder %s33_s22, %s852_s8  ;;  %p858_p5 = scmp.lt.s32.totalorder %s852_s8, %s852_s8 }
   0xe   :  { %p859_p6 = por %p858_p5, %p857_p4 }
  0x10   :  { %p860_p7 = pnand %p859_p6, %p853_p3 }
  0x12   :  { %863 = shalt.err (!%p860_p7)
}
  0x13   :  { %s984_s9 = smov 128   ;;  %s985_s10 = smov 8  }
  0x14   :  { %38 = dma.hbm_to_vmem [thread:$0]  %s1150_s1, 256, %s33_s22, [#allocation6], %s984_s9, %s984_s9, %s985_s10  }
  0x15   :  { %s864_s15 = scalar_lea.hbm %s1153_s4, 4096 }
  0x16   :  { %p865_p8 = scmp.ne.s32.totalorder %s1153_s4, %s864_s15  ;;  %p868_p9 = scmp.lt.u32.totalorder %s864_s15, %s1153_s4 }
  0x18   :  { %p870_p10 = pnand %p868_p9, %p865_p8 }
  0x1a   :  { %873 = shalt.err (!%p870_p10)
}
  0x1b   :  { %s874_s20 = scalar_lea.vmem %s1030_s24, 4096  ;;  %p879_p12 = scmp.lt.s32.totalorder %s1030_s24, %s1030_s24 }
  0x1c   :  { %p875_p11 = scmp.ne.s32.totalorder %s1030_s24, %s874_s20  ;;  %p880_p13 = scmp.lt.s32.totalorder %s874_s20, %s874_s20 }
  0x1e   :  { %p881_p0 = por %p880_p13, %p879_p12 }
  0x20   :  { %p882_p1 = pnand %p881_p0, %p875_p11 }
  0x22   :  { %885 = shalt.err (!%p882_p1)
}
  0x23   :  { %s986_s1 = smov 256   ;;  %s987_s21 = smov 16  }
  0x24   :  { %64 = dma.hbm_to_vmem [thread:$0]  %s1153_s4, 4096, %s1030_s24, [#allocation9], %s986_s1, %s986_s1, %s987_s21  }
  0x25   :  { %s988_s25 = smov [#allocation2]   ;;  %s989_s27 = smov [#allocation7]  }
  0x26   :  { %s20_s26 = sshll.u32 %s988_s25, 4  ;;  %s44_s28 = sshll.u32 %s989_s27, 4  ;;  %s21_s26 = int_to_ptr.vmem [resolvable:$true] %s20_s26  ;;  %s1064_s28 = int_to_ptr.vmem [resolvable:$true] %s44_s28 }
  0x27   :  { %s886_s7 = scalar_lea.hbm %s1149_s0, 256 }
  0x28   :  { %p887_p2 = scmp.ne.s32.totalorder %s1149_s0, %s886_s7  ;;  %p890_p3 = scmp.lt.u32.totalorder %s886_s7, %s1149_s0 }
  0x2a   :  { %p892_p4 = pnand %p890_p3, %p887_p2 }
  0x2c   :  { %895 = shalt.err (!%p892_p4)
}
  0x2d   :  { %s896_s4 = scalar_lea.vmem %s21_s26, 256  ;;  %p901_p6 = scmp.lt.s32.totalorder %s21_s26, %s21_s26 }
  0x2e   :  { %p897_p5 = scmp.ne.s32.totalorder %s21_s26, %s896_s4  ;;  %p902_p7 = scmp.lt.s32.totalorder %s896_s4, %s896_s4 }
  0x30   :  { %p903_p8 = por %p902_p7, %p901_p6 }
  0x32   :  { %p904_p9 = pnand %p903_p8, %p897_p5 }
  0x34   :  { %907 = shalt.err (!%p904_p9)
}
  0x35   :  { %26 = dma.hbm_to_vmem [thread:$0]  %s1149_s0, 256, %s21_s26, [#allocation3], %s984_s9, %s984_s9, %s985_s10  }
  0x36   :  { %s908_s17 = scalar_lea.hbm %s1151_s2, 6144 }
  0x37   :  { %p909_p10 = scmp.ne.s32.totalorder %s1151_s2, %s908_s17  ;;  %p912_p11 = scmp.lt.u32.totalorder %s908_s17, %s1151_s2 }
  0x39   :  { %p914_p12 = pnand %p912_p11, %p909_p10 }
  0x3b   :  { %917 = shalt.err (!%p914_p12)
}
  0x3c   :  { %s918_s21 = scalar_lea.vmem %s1064_s28, 6144  ;;  %p923_p0 = scmp.lt.s32.totalorder %s1064_s28, %s1064_s28 }
  0x3d   :  { %p919_p13 = scmp.ne.s32.totalorder %s1064_s28, %s918_s21  ;;  %p924_p1 = scmp.lt.s32.totalorder %s918_s21, %s918_s21 }
  0x3f   :  { %p925_p2 = por %p924_p1, %p923_p0 }
  0x41   :  { %p926_p3 = pnand %p925_p2, %p919_p13 }
  0x43   :  { %929 = shalt.err (!%p926_p3)
}
  0x44   :  { %s990_s0 = smov 384   ;;  %s991_s22 = smov 24  }
  0x45   :  { %50 = dma.hbm_to_vmem [thread:$0]  %s1151_s2, 6144, %s1064_s28, [#allocation6], %s990_s0, %s990_s0, %s991_s22  }
  0x46   :  { %s992_s26 = smov [#allocation10]   ;;  %s930_s7 = scalar_lea.hbm %s1154_s5, 2048 }
  0x47   :  { %s70_s27 = sshll.u32 %s992_s26, 4  ;;  %p931_p4 = scmp.ne.s32.totalorder %s1154_s5, %s930_s7  ;;  %s71_s27 = int_to_ptr.vmem [resolvable:$true] %s70_s27 }
  0x48   :  { %p934_p5 = scmp.lt.u32.totalorder %s930_s7, %s1154_s5 }
  0x4a   :  { %p936_p6 = pnand %p934_p5, %p931_p4 }
  0x4c   :  { %939 = shalt.err (!%p936_p6)
}
  0x4d   :  { %s940_s4 = scalar_lea.vmem %s71_s27, 2048  ;;  %p945_p8 = scmp.lt.s32.totalorder %s71_s27, %s71_s27 }
  0x4e   :  { %p941_p7 = scmp.ne.s32.totalorder %s71_s27, %s940_s4  ;;  %p946_p9 = scmp.lt.s32.totalorder %s940_s4, %s940_s4 }
  0x50   :  { %p947_p10 = por %p946_p9, %p945_p8 }
  0x52   :  { %p948_p11 = pnand %p947_p10, %p941_p7 }
  0x54   :  { %951 = shalt.err (!%p948_p11)
}
  0x55   :  { %76 = dma.hbm_to_vmem [thread:$0]  %s1154_s5, 2048, %s71_s27, [#allocation9], %s984_s9, %s984_s9, %s985_s10  }
  0x56   :  { %974 = dma.done.wait [#allocation3], 256  }
  0x57   :  { %975 = vsyncadd [#allocation3], 4294967040 }
  0x58   :  { %976 = dma.done.wait [#allocation6], 6400  }
  0x59   :  { %977 = vsyncadd [#allocation6], 4294960896 }
  0x5a   :  { %978 = dma.done.wait [#allocation9], 6144  }
  0x5b   :  { %979 = vsyncadd [#allocation9], 4294961152  ;;  %v993_v0 = vmov 0.0   ;;  %v97_v1 = vld [vmem:[#allocation7 + $0x8] sm:$0xff]  ;;  %v100_v2 = vld [vmem:[#allocation7 + $0x20] sm:$0xff] }
  0x5c   :  { %208 = vmatprep.mubr.f32.mxu0 %v993_v0  ;;  %v96_v3 = vld [vmem:[#allocation7] sm:$0xff]  ;;  %v679_v4 = vpack.c.bf16 %v100_v2, %v97_v1  ;;  %v99_v5 = vld [vmem:[#allocation7 + $0x18] sm:$0xff]  ;;  %v106_v7 = vld [vmem:[#allocation7 + $0x50] sm:$0xff] }
  0x5d   :  { %v103_v6 = vld [vmem:[#allocation7 + $0x38] sm:$0xff]  ;;  %v681_v8 = vpack.c.bf16 %v99_v5, %v96_v3  ;;  %v102_v10 = vld [vmem:[#allocation7 + $0x30] sm:$0xff]  ;;  %v105_v11 = vld [vmem:[#allocation7 + $0x48] sm:$0xff] }
  0x5e   :  { %v683_v9 = vpack.c.bf16 %v106_v7, %v103_v6  ;;  %v109_v12 = vld [vmem:[#allocation7 + $0x68] sm:$0xff]  ;;  %680 = vmatprep.subr.bf16.mxu0 %v679_v4  ;;  %v112_v13 = vld [vmem:[#allocation7 + $0x80] sm:$0xff]  ;;  %v685_v14 = vpack.c.bf16 %v105_v11, %v102_v10  ;;  %v111_v17 = vld [vmem:[#allocation7 + $0x78] sm:$0xff] }
  0x5f   :  { %682 = vmatpush1.bf16.msra.mxu0 %v681_v8  ;;  %v687_v15 = vpack.c.bf16 %v112_v13, %v109_v12  ;;  %v108_v16 = vld [vmem:[#allocation7 + $0x60] sm:$0xff]  ;;  %v115_v18 = vld [vmem:[#allocation7 + $0x98] sm:$0xff]  ;;  %v118_v19 = vld [vmem:[#allocation7 + $0xb0] sm:$0xff] }
  0x60   :  { %684 = vmatprep.subr.bf16.mxu0 %v683_v9  ;;  %v689_v20 = vpack.c.bf16 %v111_v17, %v108_v16  ;;  %v691_v21 = vpack.c.bf16 %v118_v19, %v115_v18  ;;  %v114_v22 = vld [vmem:[#allocation7 + $0x90] sm:$0xff]  ;;  %v117_v23 = vld [vmem:[#allocation7 + $0xa8] sm:$0xff]  ;;  %v124_v25 = vld [vmem:[#allocation7 + $0xe0] sm:$0xff] }
  0x61   :  { %v121_v24 = vld [vmem:[#allocation7 + $0xc8] sm:$0xff]  ;;  %v94_v26 = vld [vmem:[#allocation5] sm:$0xff]  ;;  %v693_v27 = vpack.c.bf16 %v117_v23, %v114_v22  ;;  %v120_v29 = vld [vmem:[#allocation7 + $0xc0] sm:$0xff] }
  0x62   :  { %641 = vmatprep.mubr.f32.mxu1 %v94_v26  ;;  %v695_v28 = vpack.c.bf16 %v124_v25, %v121_v24  ;;  %v123_v30 = vld [vmem:[#allocation7 + $0xd8] sm:$0xff]  ;;  %v130_v32 = vld [vmem:[#allocation7 + $0x110] sm:$0xff]  ;;  %v129_v36 = vld [vmem:[#allocation7 + $0x108] sm:$0xff] }
  0x63   :  { %686 = vmatpush1.bf16.msra.mxu0 %v685_v14  ;;  %v127_v31 = vld [vmem:[#allocation7 + $0xf8] sm:$0xff]  ;;  %v697_v33 = vpack.c.bf16 %v123_v30, %v120_v29  ;;  %v126_v35 = vld [vmem:[#allocation7 + $0xf0] sm:$0xff]  ;;  %v133_v37 = vld [vmem:[#allocation7 + $0x128] sm:$0xff] }
  0x64   :  { %688 = vmatprep.subr.bf16.mxu0 %v687_v15  ;;  %v699_v34 = vpack.c.bf16 %v130_v32, %v127_v31  ;;  %v136_v38 = vld [vmem:[#allocation7 + $0x140] sm:$0xff]  ;;  %v701_v39 = vpack.c.bf16 %v129_v36, %v126_v35  ;;  %v135_v42 = vld [vmem:[#allocation7 + $0x138] sm:$0xff]  ;;  %v142_v44 = vld [vmem:[#allocation7 + $0x170] sm:$0xff] }
  0x65   :  { %v703_v40 = vpack.c.bf16 %v136_v38, %v133_v37  ;;  %v132_v41 = vld [vmem:[#allocation7 + $0x120] sm:$0xff]  ;;  %v139_v43 = vld [vmem:[#allocation7 + $0x158] sm:$0xff]  ;;  %v138_v47 = vld [vmem:[#allocation7 + $0x150] sm:$0xff] }
  0x66   :  { %v705_v45 = vpack.c.bf16 %v135_v42, %v132_v41  ;;  %v707_v46 = vpack.c.bf16 %v142_v44, %v139_v43  ;;  %v141_v48 = vld [vmem:[#allocation7 + $0x168] sm:$0xff]  ;;  %v299_v50 = vld [vmem:[#allocation8 + $0x18] sm:$0xff]  ;;  %v296_v53 = vld [vmem:[#allocation8] sm:$0xff] }
  0x67   :  { %690 = vmatpush1.bf16.msra.mxu0 %v689_v20  ;;  %v297_v49 = vld [vmem:[#allocation8 + $0x8] sm:$0xff]  ;;  %v709_v51 = vpack.c.bf16 %v141_v48, %v138_v47  ;;  %v298_v54 = vld [vmem:[#allocation8 + $0x10] sm:$0xff]  ;;  %v303_v56 = vld [vmem:[#allocation8 + $0x38] sm:$0xff] }
  0x68   :  { %692 = vmatprep.subr.bf16.mxu0 %v691_v21  ;;  %v743_v52 = vpack.c.bf16 %v299_v50, %v297_v49  ;;  %v301_v55 = vld [vmem:[#allocation8 + $0x28] sm:$0xff]  ;;  %v745_v57 = vpack.c.bf16 %v298_v54, %v296_v53  ;;  %v300_v59 = vld [vmem:[#allocation8 + $0x20] sm:$0xff]  ;;  %v302_v60 = vld [vmem:[#allocation8 + $0x30] sm:$0xff] }
  0x69   :  { %v747_v58 = vpack.c.bf16 %v303_v56, %v301_v55  ;;  %v305_v61 = vld [vmem:[#allocation8 + $0x48] sm:$0xff]  ;;  %v307_v62 = vld [vmem:[#allocation8 + $0x58] sm:$0xff]  ;;  %v749_v63 = vpack.c.bf16 %v302_v60, %v300_v59  ;;  %v304_v3 = vld [vmem:[#allocation8 + $0x40] sm:$0xff] }
  0x6a   :  { %v1115_v1 = vld [vmem:[#allocation5 + $0x8] sm:$0xff]  ;;  %v751_v2 = vpack.c.bf16 %v307_v62, %v305_v61  ;;  %v306_v4 = vld [vmem:[#allocation8 + $0x50] sm:$0xff]  ;;  %v309_v5 = vld [vmem:[#allocation8 + $0x68] sm:$0xff] }
  0x6b   :  { %694 = vmatpush1.bf16.msra.mxu0 %v693_v27  ;;  %v311_v6 = vld [vmem:[#allocation8 + $0x78] sm:$0xff]  ;;  %v753_v7 = vpack.c.bf16 %v306_v4, %v304_v3  ;;  %v308_v9 = vld [vmem:[#allocation8 + $0x60] sm:$0xff]  ;;  %v310_v10 = vld [vmem:[#allocation8 + $0x70] sm:$0xff] }
  0x6c   :  { %696 = vmatprep.subr.bf16.mxu0 %v695_v28  ;;  %v755_v8 = vpack.c.bf16 %v311_v6, %v309_v5  ;;  %v313_v11 = vld [vmem:[#allocation8 + $0x88] sm:$0xff]  ;;  %v315_v12 = vld [vmem:[#allocation8 + $0x98] sm:$0xff]  ;;  %v757_v13 = vpack.c.bf16 %v310_v10, %v308_v9  ;;  %v312_v15 = vld [vmem:[#allocation8 + $0x80] sm:$0xff] }
  0x6d   :  { %v759_v14 = vpack.c.bf16 %v315_v12, %v313_v11  ;;  %v314_v16 = vld [vmem:[#allocation8 + $0x90] sm:$0xff]  ;;  %v317_v17 = vld [vmem:[#allocation8 + $0xa8] sm:$0xff]  ;;  %v319_v18 = vld [vmem:[#allocation8 + $0xb8] sm:$0xff] }
  0x6e   :  { %v761_v19 = vpack.c.bf16 %v314_v16, %v312_v15  ;;  %v763_v20 = vpack.c.bf16 %v319_v18, %v317_v17  ;;  %v316_v21 = vld [vmem:[#allocation8 + $0xa0] sm:$0xff]  ;;  %v318_v22 = vld [vmem:[#allocation8 + $0xb0] sm:$0xff]  ;;  %v321_v23 = vld [vmem:[#allocation8 + $0xc8] sm:$0xff] }
  0x6f   :  { %698 = vmatpush1.bf16.msra.mxu0 %v697_v33  ;;  %v323_v24 = vld [vmem:[#allocation8 + $0xd8] sm:$0xff]  ;;  %v765_v25 = vpack.c.bf16 %v318_v22, %v316_v21  ;;  %v320_v27 = vld [vmem:[#allocation8 + $0xc0] sm:$0xff]  ;;  %v322_v28 = vld [vmem:[#allocation8 + $0xd0] sm:$0xff] }
  0x70   :  { %700 = vmatprep.subr.bf16.mxu0 %v699_v34  ;;  %v325_v29 = vld [vmem:[#allocation8 + $0xe8] sm:$0xff]  ;;  %v327_v30 = vld [vmem:[#allocation8 + $0xf8] sm:$0xff]  ;;  %v769_v31 = vpack.c.bf16 %v322_v28, %v320_v27  ;;  %v324_v33 = vld [vmem:[#allocation8 + $0xe0] sm:$0xff] }
  0x71   :  { %v771_v32 = vpack.c.bf16 %v327_v30, %v325_v29  ;;  %v326_v34 = vld [vmem:[#allocation8 + $0xf0] sm:$0xff]  ;;  %v1119_v36 = vld [vmem:[#allocation2] sm:$0xff]  ;;  %v1123_v37 = vld [vmem:[#allocation2 + $0x8] sm:$0xff] }
  0x72   :  { %v773_v35 = vpack.c.bf16 %v326_v34, %v324_v33  ;;  %v98_v38 = vld [vmem:[#allocation7 + $0x10] sm:$0xff]  ;;  %v107_v42 = vld [vmem:[#allocation7 + $0x58] sm:$0xff]  ;;  %v116_v47 = vld [vmem:[#allocation7 + $0xa0] sm:$0xff] }
  0x73   :  { %702 = vmatpush1.bf16.msra.mxu0 %v701_v39  ;;  %v101_v39 = vld [vmem:[#allocation7 + $0x28] sm:$0xff]  ;;  %v110_v44 = vld [vmem:[#allocation7 + $0x70] sm:$0xff]  ;;  %v119_v48 = vld [vmem:[#allocation7 + $0xb8] sm:$0xff] }
  0x74   :  { %704 = vmatprep.subr.bf16.mxu0 %v703_v40  ;;  %v104_v40 = vld [vmem:[#allocation7 + $0x40] sm:$0xff]  ;;  %v711_v41 = vpack.c.bf16 %v101_v39, %v98_v38  ;;  %v122_v49 = vld [vmem:[#allocation7 + $0xd0] sm:$0xff]  ;;  %v125_v50 = vld [vmem:[#allocation7 + $0xe8] sm:$0xff] }
  0x75   :  { %v715_v43 = vpack.c.bf16 %v107_v42, %v104_v40  ;;  %v131_v53 = vld [vmem:[#allocation7 + $0x118] sm:$0xff]  ;;  %v134_v55 = vld [vmem:[#allocation7 + $0x130] sm:$0xff]  ;;  %v137_v56 = vld [vmem:[#allocation7 + $0x148] sm:$0xff] }
  0x76   :  { %712 = vmatprep.subr.bf16.mxu1 %v711_v41  ;;  %v143_v59 = vld [vmem:[#allocation7 + $0x178] sm:$0xff]  ;;  %v444_v61 = vld [vmem:[#allocation10] sm:$0xff]  ;;  %v445_v62 = vld [vmem:[#allocation10 + $0x8] sm:$0xff] }
  0x77   :  { %706 = vmatpush1.bf16.msra.mxu0 %v705_v45  ;;  %v113_v45 = vld [vmem:[#allocation7 + $0x88] sm:$0xff]  ;;  %714 = vmatpush3.bf16.msra.mxu1 %v711_v41  ;;  %v447_v3 = vld [vmem:[#allocation10 + $0x18] sm:$0xff]  ;;  %v448_v5 = vld [vmem:[#allocation10 + $0x20] sm:$0xff] }
  0x78   :  { %708 = vmatprep.subr.bf16.mxu0 %v707_v46  ;;  %716 = vmatprep.subr.bf16.mxu1 %v715_v43  ;;  %v719_v46 = vpack.c.bf16 %v113_v45, %v110_v44  ;;  %v449_v6 = vld [vmem:[#allocation10 + $0x28] sm:$0xff]  ;;  %v451_v9 = vld [vmem:[#allocation10 + $0x38] sm:$0xff]  ;;  %v452_v11 = vld [vmem:[#allocation10 + $0x40] sm:$0xff] }
  0x79   :  { %v453_v12 = vld [vmem:[#allocation10 + $0x48] sm:$0xff]  ;;  %v456_v16 = vld [vmem:[#allocation10 + $0x60] sm:$0xff]  ;;  %v458_v18 = vld [vmem:[#allocation10 + $0x70] sm:$0xff] }
  0x7a   :  { %v457_v17 = vld [vmem:[#allocation10 + $0x68] sm:$0xff] }
  0x7b   :  { %710 = vmatpush1.bf16.msra.mxu0 %v709_v51  ;;  %718 = vmatpush3.bf16.msra.mxu1 %v715_v43  ;;  %v727_v51 = vpack.c.bf16 %v125_v50, %v122_v49 }
  0x7c   :  { %744 = vmatprep.subr.bf16.mxu0 %v743_v52  ;;  %720 = vmatprep.subr.bf16.mxu1 %v719_v46  ;;  %v128_v52 = vld [vmem:[#allocation7 + $0x100] sm:$0xff] }
  0x7d   :  { %v731_v54 = vpack.c.bf16 %v131_v53, %v128_v52 }
  0x7e   :  { %209 = vmatmul.mubr.f32.vlgmr.msra.gmra.mrb[0].mxu0 %v94_v26  ;;  %v767_v26 = vpack.c.bf16 %v323_v24, %v321_v23 }
  0x7f   :  { %746 = vmatpush1.bf16.msra.mxu0 %v745_v57  ;;  %214 = vmatprep.mubr.f32.mxu0 %v993_v0  ;;  %v735_v57 = vpack.c.bf16 %v137_v56, %v134_v55 }
  0x80   :  { %748 = vmatprep.subr.bf16.mxu0 %v747_v58  ;;  %722 = vmatpush3.bf16.msra.mxu1 %v719_v46  ;;  %v140_v58 = vld [vmem:[#allocation7 + $0x160] sm:$0xff] }
  0x81   :  { %v739_v60 = vpack.c.bf16 %v143_v59, %v140_v58 }
  0x82   :  { %215 = vmatmul.mubr.f32.gmra.mrb[2].mxu0 %v1115_v1 }
  0x83   :  { %750 = vmatpush1.bf16.msra.mxu0 %v749_v63  ;;  %392 = vmatprep.mubr.f32.mxu0 %v993_v0  ;;  %v775_v63 = vpack.c.bf16 %v445_v62, %v444_v61 }
  0x84   :  { %752 = vmatprep.subr.bf16.mxu0 %v751_v2  ;;  %v446_v2 = vld [vmem:[#allocation10 + $0x10] sm:$0xff] }
  0x85   :  { %v779_v4 = vpack.c.bf16 %v447_v3, %v446_v2 }
  0x87   :  { %754 = vmatpush1.bf16.msra.mxu0 %v753_v7  ;;  %v783_v7 = vpack.c.bf16 %v449_v6, %v448_v5 }
  0x88   :  { %756 = vmatprep.subr.bf16.mxu0 %v755_v8  ;;  %v450_v8 = vld [vmem:[#allocation10 + $0x30] sm:$0xff] }
  0x89   :  { %v787_v10 = vpack.c.bf16 %v451_v9, %v450_v8 }
  0x8b   :  { %758 = vmatpush1.bf16.msra.mxu0 %v757_v13  ;;  %v791_v13 = vpack.c.bf16 %v453_v12, %v452_v11 }
  0x8c   :  { %760 = vmatprep.subr.bf16.mxu0 %v759_v14  ;;  %v455_v14 = vld [vmem:[#allocation10 + $0x58] sm:$0xff] }
  0x8f   :  { %762 = vmatpush1.bf16.msra.mxu0 %v761_v19  ;;  %v799_v19 = vpack.c.bf16 %v457_v17, %v456_v16 }
  0x90   :  { %764 = vmatprep.subr.bf16.mxu0 %v763_v20  ;;  %v459_v20 = vld [vmem:[#allocation10 + $0x78] sm:$0xff] }
  0x91   :  { %v803_v21 = vpack.c.bf16 %v459_v20, %v458_v18 }
  0x93   :  { %766 = vmatpush1.bf16.msra.mxu0 %v765_v25 }
  0x94   :  { %768 = vmatprep.subr.bf16.mxu0 %v767_v26  ;;  %v568_v26 = vld [vmem:[%s1152_s3] ss:$0 sm:$0xff]  ;;  %s994_s3 = smov [#allocation11]  }
  0x95   :  { %s554_s14 = sshll.u32 %s994_s3, 4  ;;  %s555_s14 = int_to_ptr.vmem [resolvable:$true] %s554_s14 }
  0x96   :  { %s952_s15 = scalar_lea.vmem %s555_s14, 256  ;;  %p957_p13 = scmp.lt.s32.totalorder %s555_s14, %s555_s14 }
  0x97   :  { %770 = vmatpush1.bf16.msra.mxu0 %v769_v31  ;;  %p953_p12 = scmp.ne.s32.totalorder %s555_s14, %s952_s15  ;;  %p958_p0 = scmp.lt.s32.totalorder %s952_s15, %s952_s15 }
  0x98   :  { %772 = vmatprep.subr.bf16.mxu0 %v771_v32 }
  0x99   :  { %p959_p1 = por %p958_p0, %p957_p13 }
  0x9b   :  { %774 = vmatpush1.bf16.msra.mxu0 %v773_v35  ;;  %p960_p2 = pnand %p959_p1, %p953_p12 }
  0x9e   :  { %393 = vmatmul.mubr.f32.vlgmr.msra.gmra.mrb[4].mxu0 %v1119_v36 }
  0x9f   :  { %398 = vmatprep.mubr.f32.mxu0 %v993_v0  ;;  %v723_v0 = vpack.c.bf16 %v119_v48, %v116_v47 }
  0xa1   :  { %724 = vmatprep.subr.bf16.mxu1 %v723_v0 }
  0xa2   :  { %399 = vmatmul.mubr.f32.gmra.mrb[6].mxu0 %v1123_v37  ;;  %726 = vmatpush3.bf16.msra.mxu1 %v723_v0 }
  0xa3   :  { %728 = vmatprep.subr.bf16.mxu1 %v727_v51 }
  0xa6   :  { %730 = vmatpush3.bf16.msra.mxu1 %v727_v51 }
  0xa7   :  { %732 = vmatprep.subr.bf16.mxu1 %v731_v54 }
  0xaa   :  { %734 = vmatpush3.bf16.msra.mxu1 %v731_v54 }
  0xab   :  { %736 = vmatprep.subr.bf16.mxu1 %v735_v57 }
  0xae   :  { %738 = vmatpush3.bf16.msra.mxu1 %v735_v57 }
  0xaf   :  { %740 = vmatprep.subr.bf16.mxu1 %v739_v60 }
  0xb2   :  { %742 = vmatpush3.bf16.msra.mxu1 %v739_v60 }
  0xb3   :  { %776 = vmatprep.subr.bf16.mxu1 %v775_v63 }
  0xb5   :  { %642 = vmatmul.mubr.f32.vlgmr.msra.gmra.mrb[0].mxu1 %v1115_v1  ;;  %v454_v1 = vld [vmem:[#allocation10 + $0x50] sm:$0xff] }
  0xb6   :  { %778 = vmatpush3.bf16.msra.mxu1 %v775_v63  ;;  %v795_v15 = vpack.c.bf16 %v455_v14, %v454_v1 }
  0xb7   :  { %780 = vmatprep.subr.bf16.mxu1 %v779_v4 }
  0xba   :  { %782 = vmatpush3.bf16.msra.mxu1 %v779_v4 }
  0xbb   :  { %784 = vmatprep.subr.bf16.mxu1 %v783_v7 }
  0xbe   :  { %786 = vmatpush3.bf16.msra.mxu1 %v783_v7 }
  0xbf   :  { %788 = vmatprep.subr.bf16.mxu1 %v787_v10 }
  0xc2   :  { %790 = vmatpush3.bf16.msra.mxu1 %v787_v10 }
  0xc3   :  { %792 = vmatprep.subr.bf16.mxu1 %v791_v13 }
  0xc6   :  { %794 = vmatpush3.bf16.msra.mxu1 %v791_v13 }
  0xc7   :  { %796 = vmatprep.subr.bf16.mxu1 %v795_v15 }
  0xca   :  { %798 = vmatpush3.bf16.msra.mxu1 %v795_v15 }
  0xcb   :  { %800 = vmatprep.subr.bf16.mxu1 %v799_v19 }
  0xce   :  { %802 = vmatpush3.bf16.msra.mxu1 %v799_v19 }
  0xcf   :  { %804 = vmatprep.subr.bf16.mxu1 %v803_v21 }
  0xd2   :  { %806 = vmatpush3.bf16.msra.mxu1 %v803_v21 }
 0x151   :  { %v210_v22 = vpop.f32.mrb[0].mxu0 }
 0x152   :  { %v212_v23 = vpop.f32.mrb[1].mxu0  ;;  %v412_v27 = vadd.f32 %v568_v26, %v210_v22 }
 0x155   :  { %v216_v24 = vpop.f32.mrb[2].mxu0 }
 0x156   :  { %v218_v25 = vpop.f32.mrb[3].mxu0  ;;  %v413_v32 = vadd.f32 %v568_v26, %v216_v24 }
 0x171   :  { %v394_v28 = vpop.f32.mrb[4].mxu0 }
 0x172   :  { %v414_v29 = vadd.f32 %v412_v27, %v394_v28  ;;  %v396_v30 = vpop.f32.mrb[5].mxu0 }
 0x173   :  { %v428_v31 = vadd.f32 %v396_v30, %v212_v23 }
 0x174   :  { %v569_v49 = vmul.f32 -1.442695, %v414_v29 }
 0x175   :  { %v571_v33 = vmul.f32 -1.442695, %v428_v31  ;;  %v400_v34 = vpop.f32.mrb[6].mxu0 }
 0x176   :  { %v415_v35 = vadd.f32 %v413_v32, %v400_v34  ;;  %v402_v38 = vpop.f32.mrb[7].mxu0 }
 0x177   :  { %822 = vpow2.f32 %v571_v33  ;;  %v429_v39 = vadd.f32 %v402_v38, %v218_v25 }
 0x178   :  { %v570_v0 = vmul.f32 -1.442695, %v415_v35 }
 0x179   :  { %v572_v40 = vmul.f32 -1.442695, %v429_v39 }
 0x17b   :  { %824 = vpow2.f32 %v572_v40 }
 0x181   :  { %v823_v41 = vpop.eup %822 }
 0x182   :  { %v436_v42 = vadd.f32 1.0, %v823_v41 }
 0x184   :  { %826 = vrcp.f32 %v436_v42 }
 0x185   :  { %v825_v43 = vpop.eup %824 }
 0x186   :  { %v437_v44 = vadd.f32 1.0, %v825_v43 }
 0x188   :  { %828 = vrcp.f32 %v437_v44 }
 0x189   :  { %830 = vpow2.f32 %v570_v0 }
 0x18a   :  { %832 = vpow2.f32 %v569_v49 }
 0x18e   :  { %v827_v45 = vpop.eup %826 }
 0x18f   :  { %v442_v46 = vmul.f32 %v827_v45, %v1119_v36 }
 0x191   :  { %676 = vmatprep.mubr.f32.mxu1 %v442_v46 }
 0x192   :  { %v829_v47 = vpop.eup %828 }
 0x193   :  { %v443_v48 = vmul.f32 %v829_v47, %v1123_v37  ;;  %v831_v50 = vpop.eup %830 }
 0x194   :  { %v833_v51 = vpop.eup %832  ;;  %v423_v52 = vadd.f32 1.0, %v831_v50 }
 0x195   :  { %677 = vmatmul.mubr.f32.vlgmr.msra.gmra.mrb[0].mxu1 %v443_v48  ;;  %v422_v53 = vadd.f32 1.0, %v833_v51 }
 0x196   :  { %834 = vrcp.f32 %v423_v52 }
 0x197   :  { %836 = vrcp.f32 %v422_v53 }
 0x1a0   :  { %v835_v56 = vpop.eup %834 }
 0x1a1   :  { %v837_v57 = vpop.eup %836  ;;  %v540_v58 = vsub.f32 1.0, %v835_v56 }
 0x1a2   :  { %v539_v59 = vsub.f32 1.0, %v837_v57 }
 0x1a3   :  { %v542_v62 = vmul.f32 %v540_v58, %v1123_v37 }
 0x1a4   :  { %v541_v2 = vmul.f32 %v539_v59, %v1119_v36 }
 0x268   :  { %v678_v54 = vpop.f32.mrb[0].mxu1 }
 0x269   :  { %838 = vtanh.f32 %v678_v54  ;;  %v526_v55 = vpop.f32.mrb[1].mxu1 }
 0x26a   :  { %840 = vtanh.f32 %v526_v55 }
 0x273   :  { %v839_v60 = vpop.eup %838 }
 0x274   :  { %v841_v61 = vpop.eup %840  ;;  %v544_v63 = vmul.f32 %v839_v60, %v835_v56 }
 0x275   :  { %v543_v3 = vmul.f32 %v841_v61, %v837_v57 }
 0x276   :  { %v546_v4 = vadd.f32 %v544_v63, %v542_v62 }
 0x277   :  { %v545_v5 = vadd.f32 %v543_v3, %v541_v2 }
 0x278   :  { %548 = vst [vmem:[#allocation11 + $0x8] sm:$0xff] %v546_v4 }
 0x279   :  { %547 = vst [vmem:[#allocation11] sm:$0xff] %v545_v5 }
 0x27a   :  { %963 = shalt.err (!%p960_p2)
}
 0x27b   :  { %s964_s18 = scalar_lea.hbm %s1155_s6, 256 }
 0x27c   :  { %p965_p3 = scmp.ne.s32.totalorder %s1155_s6, %s964_s18  ;;  %p968_p4 = scmp.lt.u32.totalorder %s964_s18, %s1155_s6 }
 0x27e   :  { %p970_p5 = pnand %p968_p4, %p965_p3 }
 0x280   :  { %973 = shalt.err (!%p970_p5)
}
 0x281   :  { %560 = dma.vmem_to_hbm [thread:$0]  %s555_s14, 256, %s1155_s6, [#allocation4], %s984_s9, %s984_s9, %s985_s10  }
 0x282   :  { %980 = dma.done.wait [#allocation4], 256  }
 0x283   :  { %981 = vsyncadd [#allocation4], 4294967040 }
 0x284   :  { %564 = vsyncpa [#allocation3], 1 }
 0x285   :  { %565 = vsyncpa [#allocation6], 1 }
 0x286   :  { %566 = vsyncpa [#allocation9], 1 }
 0x287   :  { %567 = vsyncpa [#allocation4], 1 }

// kernel: tpu_custom_call.1
= control target key start
LH: loop header
LB: loop body
LE: loop exit
PB: predicated region body
PF: predicated region fallthrough
CT: control target
= control target key end

     0   :  { %11 = vsyncpa [#allocation3], 0  ;;  %s1149_s0 = inlined_call_operand.hbm [shape: f32[16,128], index: 0, kind: input, shape index: {}]   ;;  %s1150_s1 = inlined_call_operand.hbm [shape: f32[16,128], index: 1, kind: input, shape index: {}]   ;;  %s1151_s2 = inlined_call_operand.hbm [shape: f32[128,384], index: 2, kind: input, shape index: {}]   ;;  %s1152_s3 = inlined_call_operand.vmem [shape: f32[1,128], index: 3, kind: input, shape index: {}]   ;;  %s1153_s4 = inlined_call_operand.hbm [shape: f32[128,256], index: 4, kind: input, shape index: {}]   ;;  %s1154_s5 = inlined_call_operand.hbm [shape: f32[128,128], index: 5, kind: input, shape index: {}]   ;;  %s1155_s6 = inlined_call_operand.hbm [shape: f32[16,128], index: 6, kind: output, shape index: {}]  }
   0x1   :  { %12 = vsyncpa [#allocation6], 0 }
   0x2   :  { %13 = vsyncpa [#allocation9], 0 }
   0x3   :  { %14 = vsyncpa [#allocation4], 0  ;;  %s982_s21 = smov [#allocation5]   ;;  %s983_s23 = smov [#allocation8]  }
   0x4   :  { %s32_s22 = sshll.u32 %s982_s21, 4  ;;  %s58_s24 = sshll.u32 %s983_s23, 4  ;;  %s33_s22 = int_to_ptr.vmem [resolvable:$true] %s32_s22  ;;  %s1030_s24 = int_to_ptr.vmem [resolvable:$true] %s58_s24 }
   0x5   :  { %s842_s27 = scalar_lea.hbm %s1150_s1, 256 }
   0x6   :  { %p843_p0 = scmp.ne.s32.totalorder %s1150_s1, %s842_s27  ;;  %p846_p1 = scmp.lt.u32.totalorder %s842_s27, %s1150_s1 }
   0x8   :  { %p848_p2 = pnand %p846_p1, %p843_p0 }
   0xa   :  { %851 = shalt.err (!%p848_p2)
}
   0xb   :  { %s852_s8 = scalar_lea.vmem %s33_s22, 256  ;;  %p857_p4 = scmp.lt.s32.totalorder %s33_s22, %s33_s22 }
   0xc   :  { %p853_p3 = scmp.ne.s32.totalorder %s33_s22, %s852_s8  ;;  %p858_p5 = scmp.lt.s32.totalorder %s852_s8, %s852_s8 }
   0xe   :  { %p859_p6 = por %p858_p5, %p857_p4 }
  0x10   :  { %p860_p7 = pnand %p859_p6, %p853_p3 }
  0x12   :  { %863 = shalt.err (!%p860_p7)
}
  0x13   :  { %s984_s9 = smov 128   ;;  %s985_s10 = smov 8  }
  0x14   :  { %38 = dma.hbm_to_vmem [thread:$0]  %s1150_s1, 256, %s33_s22, [#allocation6], %s984_s9, %s984_s9, %s985_s10  }
  0x15   :  { %s864_s15 = scalar_lea.hbm %s1153_s4, 4096 }
  0x16   :  { %p865_p8 = scmp.ne.s32.totalorder %s1153_s4, %s864_s15  ;;  %p868_p9 = scmp.lt.u32.totalorder %s864_s15, %s1153_s4 }
  0x18   :  { %p870_p10 = pnand %p868_p9, %p865_p8 }
  0x1a   :  { %873 = shalt.err (!%p870_p10)
}
  0x1b   :  { %s874_s20 = scalar_lea.vmem %s1030_s24, 4096  ;;  %p879_p12 = scmp.lt.s32.totalorder %s1030_s24, %s1030_s24 }
  0x1c   :  { %p875_p11 = scmp.ne.s32.totalorder %s1030_s24, %s874_s20  ;;  %p880_p13 = scmp.lt.s32.totalorder %s874_s20, %s874_s20 }
  0x1e   :  { %p881_p0 = por %p880_p13, %p879_p12 }
  0x20   :  { %p882_p1 = pnand %p881_p0, %p875_p11 }
  0x22   :  { %885 = shalt.err (!%p882_p1)
}
  0x23   :  { %s986_s1 = smov 256   ;;  %s987_s21 = smov 16  }
  0x24   :  { %64 = dma.hbm_to_vmem [thread:$0]  %s1153_s4, 4096, %s1030_s24, [#allocation9], %s986_s1, %s986_s1, %s987_s21  }
  0x25   :  { %s988_s25 = smov [#allocation2]   ;;  %s989_s27 = smov [#allocation7]  }
  0x26   :  { %s20_s26 = sshll.u32 %s988_s25, 4  ;;  %s44_s28 = sshll.u32 %s989_s27, 4  ;;  %s21_s26 = int_to_ptr.vmem [resolvable:$true] %s20_s26  ;;  %s1064_s28 = int_to_ptr.vmem [resolvable:$true] %s44_s28 }
  0x27   :  { %s886_s7 = scalar_lea.hbm %s1149_s0, 256 }
  0x28   :  { %p887_p2 = scmp.ne.s32.totalorder %s1149_s0, %s886_s7  ;;  %p890_p3 = scmp.lt.u32.totalorder %s886_s7, %s1149_s0 }
  0x2a   :  { %p892_p4 = pnand %p890_p3, %p887_p2 }
  0x2c   :  { %895 = shalt.err (!%p892_p4)
}
  0x2d   :  { %s896_s4 = scalar_lea.vmem %s21_s26, 256  ;;  %p901_p6 = scmp.lt.s32.totalorder %s21_s26, %s21_s26 }
  0x2e   :  { %p897_p5 = scmp.ne.s32.totalorder %s21_s26, %s896_s4  ;;  %p902_p7 = scmp.lt.s32.totalorder %s896_s4, %s896_s4 }
  0x30   :  { %p903_p8 = por %p902_p7, %p901_p6 }
  0x32   :  { %p904_p9 = pnand %p903_p8, %p897_p5 }
  0x34   :  { %907 = shalt.err (!%p904_p9)
}
  0x35   :  { %26 = dma.hbm_to_vmem [thread:$0]  %s1149_s0, 256, %s21_s26, [#allocation3], %s984_s9, %s984_s9, %s985_s10  }
  0x36   :  { %s908_s17 = scalar_lea.hbm %s1151_s2, 6144 }
  0x37   :  { %p909_p10 = scmp.ne.s32.totalorder %s1151_s2, %s908_s17  ;;  %p912_p11 = scmp.lt.u32.totalorder %s908_s17, %s1151_s2 }
  0x39   :  { %p914_p12 = pnand %p912_p11, %p909_p10 }
  0x3b   :  { %917 = shalt.err (!%p914_p12)
}
  0x3c   :  { %s918_s21 = scalar_lea.vmem %s1064_s28, 6144  ;;  %p923_p0 = scmp.lt.s32.totalorder %s1064_s28, %s1064_s28 }
  0x3d   :  { %p919_p13 = scmp.ne.s32.totalorder %s1064_s28, %s918_s21  ;;  %p924_p1 = scmp.lt.s32.totalorder %s918_s21, %s918_s21 }
  0x3f   :  { %p925_p2 = por %p924_p1, %p923_p0 }
  0x41   :  { %p926_p3 = pnand %p925_p2, %p919_p13 }
  0x43   :  { %929 = shalt.err (!%p926_p3)
}
  0x44   :  { %s990_s0 = smov 384   ;;  %s991_s22 = smov 24  }
  0x45   :  { %50 = dma.hbm_to_vmem [thread:$0]  %s1151_s2, 6144, %s1064_s28, [#allocation6], %s990_s0, %s990_s0, %s991_s22  }
  0x46   :  { %s992_s26 = smov [#allocation10]   ;;  %s930_s7 = scalar_lea.hbm %s1154_s5, 2048 }
  0x47   :  { %s70_s27 = sshll.u32 %s992_s26, 4  ;;  %p931_p4 = scmp.ne.s32.totalorder %s1154_s5, %s930_s7  ;;  %s71_s27 = int_to_ptr.vmem [resolvable:$true] %s70_s27 }
  0x48   :  { %p934_p5 = scmp.lt.u32.totalorder %s930_s7, %s1154_s5 }
  0x4a   :  { %p936_p6 = pnand %p934_p5, %p931_p4 }
  0x4c   :  { %939 = shalt.err (!%p936_p6)
}
  0x4d   :  { %s940_s4 = scalar_lea.vmem %s71_s27, 2048  ;;  %p945_p8 = scmp.lt.s32.totalorder %s71_s27, %s71_s27 }
  0x4e   :  { %p941_p7 = scmp.ne.s32.totalorder %s71_s27, %s940_s4  ;;  %p946_p9 = scmp.lt.s32.totalorder %s940_s4, %s940_s4 }
  0x50   :  { %p947_p10 = por %p946_p9, %p945_p8 }
  0x52   :  { %p948_p11 = pnand %p947_p10, %p941_p7 }
  0x54   :  { %951 = shalt.err (!%p948_p11)
}
  0x55   :  { %76 = dma.hbm_to_vmem [thread:$0]  %s1154_s5, 2048, %s71_s27, [#allocation9], %s984_s9, %s984_s9, %s985_s10  }
  0x56   :  { %974 = dma.done.wait [#allocation3], 256  }
  0x57   :  { %975 = vsyncadd [#allocation3], 4294967040 }
  0x58   :  { %976 = dma.done.wait [#allocation6], 6400  }
  0x59   :  { %977 = vsyncadd [#allocation6], 4294960896 }
  0x5a   :  { %978 = dma.done.wait [#allocation9], 6144  }
  0x5b   :  { %979 = vsyncadd [#allocation9], 4294961152  ;;  %v993_v0 = vmov 0.0   ;;  %v97_v1 = vld [vmem:[#allocation7 + $0x8] sm:$0xff]  ;;  %v100_v2 = vld [vmem:[#allocation7 + $0x20] sm:$0xff] }
  0x5c   :  { %208 = vmatprep.mubr.f32.mxu0 %v993_v0  ;;  %v96_v3 = vld [vmem:[#allocation7] sm:$0xff]  ;;  %v679_v4 = vpack.c.bf16 %v100_v2, %v97_v1  ;;  %v99_v5 = vld [vmem:[#allocation7 + $0x18] sm:$0xff]  ;;  %v106_v7 = vld [vmem:[#allocation7 + $0x50] sm:$0xff] }
  0x5d   :  { %v103_v6 = vld [vmem:[#allocation7 + $0x38] sm:$0xff]  ;;  %v681_v8 = vpack.c.bf16 %v99_v5, %v96_v3  ;;  %v102_v10 = vld [vmem:[#allocation7 + $0x30] sm:$0xff]  ;;  %v105_v11 = vld [vmem:[#allocation7 + $0x48] sm:$0xff] }
  0x5e   :  { %v683_v9 = vpack.c.bf16 %v106_v7, %v103_v6  ;;  %v109_v12 = vld [vmem:[#allocation7 + $0x68] sm:$0xff]  ;;  %680 = vmatprep.subr.bf16.mxu0 %v679_v4  ;;  %v112_v13 = vld [vmem:[#allocation7 + $0x80] sm:$0xff]  ;;  %v685_v14 = vpack.c.bf16 %v105_v11, %v102_v10  ;;  %v111_v17 = vld [vmem:[#allocation7 + $0x78] sm:$0xff] }
  0x5f   :  { %682 = vmatpush1.bf16.msra.mxu0 %v681_v8  ;;  %v687_v15 = vpack.c.bf16 %v112_v13, %v109_v12  ;;  %v108_v16 = vld [vmem:[#allocation7 + $0x60] sm:$0xff]  ;;  %v115_v18 = vld [vmem:[#allocation7 + $0x98] sm:$0xff]  ;;  %v118_v19 = vld [vmem:[#allocation7 + $0xb0] sm:$0xff] }
  0x60   :  { %684 = vmatprep.subr.bf16.mxu0 %v683_v9  ;;  %v689_v20 = vpack.c.bf16 %v111_v17, %v108_v16  ;;  %v691_v21 = vpack.c.bf16 %v118_v19, %v115_v18  ;;  %v114_v22 = vld [vmem:[#allocation7 + $0x90] sm:$0xff]  ;;  %v117_v23 = vld [vmem:[#allocation7 + $0xa8] sm:$0xff]  ;;  %v124_v25 = vld [vmem:[#allocation7 + $0xe0] sm:$0xff] }
  0x61   :  { %v121_v24 = vld [vmem:[#allocation7 + $0xc8] sm:$0xff]  ;;  %v94_v26 = vld [vmem:[#allocation5] sm:$0xff]  ;;  %v693_v27 = vpack.c.bf16 %v117_v23, %v114_v22  ;;  %v120_v29 = vld [vmem:[#allocation7 + $0xc0] sm:$0xff] }
  0x62   :  { %641 = vmatprep.mubr.f32.mxu1 %v94_v26  ;;  %v695_v28 = vpack.c.bf16 %v124_v25, %v121_v24  ;;  %v123_v30 = vld [vmem:[#allocation7 + $0xd8] sm:$0xff]  ;;  %v130_v32 = vld [vmem:[#allocation7 + $0x110] sm:$0xff]  ;;  %v129_v36 = vld [vmem:[#allocation7 + $0x108] sm:$0xff] }
  0x63   :  { %686 = vmatpush1.bf16.msra.mxu0 %v685_v14  ;;  %v127_v31 = vld [vmem:[#allocation7 + $0xf8] sm:$0xff]  ;;  %v697_v33 = vpack.c.bf16 %v123_v30, %v120_v29  ;;  %v126_v35 = vld [vmem:[#allocation7 + $0xf0] sm:$0xff]  ;;  %v133_v37 = vld [vmem:[#allocation7 + $0x128] sm:$0xff] }
  0x64   :  { %688 = vmatprep.subr.bf16.mxu0 %v687_v15  ;;  %v699_v34 = vpack.c.bf16 %v130_v32, %v127_v31  ;;  %v136_v38 = vld [vmem:[#allocation7 + $0x140] sm:$0xff]  ;;  %v701_v39 = vpack.c.bf16 %v129_v36, %v126_v35  ;;  %v135_v42 = vld [vmem:[#allocation7 + $0x138] sm:$0xff]  ;;  %v142_v44 = vld [vmem:[#allocation7 + $0x170] sm:$0xff] }
  0x65   :  { %v703_v40 = vpack.c.bf16 %v136_v38, %v133_v37  ;;  %v132_v41 = vld [vmem:[#allocation7 + $0x120] sm:$0xff]  ;;  %v139_v43 = vld [vmem:[#allocation7 + $0x158] sm:$0xff]  ;;  %v138_v47 = vld [vmem:[#allocation7 + $0x150] sm:$0xff] }
  0x66   :  { %v705_v45 = vpack.c.bf16 %v135_v42, %v132_v41  ;;  %v707_v46 = vpack.c.bf16 %v142_v44, %v139_v43  ;;  %v141_v48 = vld [vmem:[#allocation7 + $0x168] sm:$0xff]  ;;  %v299_v50 = vld [vmem:[#allocation8 + $0x18] sm:$0xff]  ;;  %v296_v53 = vld [vmem:[#allocation8] sm:$0xff] }
  0x67   :  { %690 = vmatpush1.bf16.msra.mxu0 %v689_v20  ;;  %v297_v49 = vld [vmem:[#allocation8 + $0x8] sm:$0xff]  ;;  %v709_v51 = vpack.c.bf16 %v141_v48, %v138_v47  ;;  %v298_v54 = vld [vmem:[#allocation8 + $0x10] sm:$0xff]  ;;  %v303_v56 = vld [vmem:[#allocation8 + $0x38] sm:$0xff] }
  0x68   :  { %692 = vmatprep.subr.bf16.mxu0 %v691_v21  ;;  %v743_v52 = vpack.c.bf16 %v299_v50, %v297_v49  ;;  %v301_v55 = vld [vmem:[#allocation8 + $0x28] sm:$0xff]  ;;  %v745_v57 = vpack.c.bf16 %v298_v54, %v296_v53  ;;  %v300_v59 = vld [vmem:[#allocation8 + $0x20] sm:$0xff]  ;;  %v302_v60 = vld [vmem:[#allocation8 + $0x30] sm:$0xff] }
  0x69   :  { %v747_v58 = vpack.c.bf16 %v303_v56, %v301_v55  ;;  %v305_v61 = vld [vmem:[#allocation8 + $0x48] sm:$0xff]  ;;  %v307_v62 = vld [vmem:[#allocation8 + $0x58] sm:$0xff]  ;;  %v749_v63 = vpack.c.bf16 %v302_v60, %v300_v59  ;;  %v304_v3 = vld [vmem:[#allocation8 + $0x40] sm:$0xff] }
  0x6a   :  { %v1115_v1 = vld [vmem:[#allocation5 + $0x8] sm:$0xff]  ;;  %v751_v2 = vpack.c.bf16 %v307_v62, %v305_v61  ;;  %v306_v4 = vld [vmem:[#allocation8 + $0x50] sm:$0xff]  ;;  %v309_v5 = vld [vmem:[#allocation8 + $0x68] sm:$0xff] }
  0x6b   :  { %694 = vmatpush1.bf16.msra.mxu0 %v693_v27  ;;  %v311_v6 = vld [vmem:[#allocation8 + $0x78] sm:$0xff]  ;;  %v753_v7 = vpack.c.bf16 %v306_v4, %v304_v3  ;;  %v308_v9 = vld [vmem:[#allocation8 + $0x60] sm:$0xff]  ;;  %v310_v10 = vld [vmem:[#allocation8 + $0x70] sm:$0xff] }
  0x6c   :  { %696 = vmatprep.subr.bf16.mxu0 %v695_v28  ;;  %v755_v8 = vpack.c.bf16 %v311_v6, %v309_v5  ;;  %v313_v11 = vld [vmem:[#allocation8 + $0x88] sm:$0xff]  ;;  %v315_v12 = vld [vmem:[#allocation8 + $0x98] sm:$0xff]  ;;  %v757_v13 = vpack.c.bf16 %v310_v10, %v308_v9  ;;  %v312_v15 = vld [vmem:[#allocation8 + $0x80] sm:$0xff] }
  0x6d   :  { %v759_v14 = vpack.c.bf16 %v315_v12, %v313_v11  ;;  %v314_v16 = vld [vmem:[#allocation8 + $0x90] sm:$0xff]  ;;  %v317_v17 = vld [vmem:[#allocation8 + $0xa8] sm:$0xff]  ;;  %v319_v18 = vld [vmem:[#allocation8 + $0xb8] sm:$0xff] }
  0x6e   :  { %v761_v19 = vpack.c.bf16 %v314_v16, %v312_v15  ;;  %v763_v20 = vpack.c.bf16 %v319_v18, %v317_v17  ;;  %v316_v21 = vld [vmem:[#allocation8 + $0xa0] sm:$0xff]  ;;  %v318_v22 = vld [vmem:[#allocation8 + $0xb0] sm:$0xff]  ;;  %v321_v23 = vld [vmem:[#allocation8 + $0xc8] sm:$0xff] }
  0x6f   :  { %698 = vmatpush1.bf16.msra.mxu0 %v697_v33  ;;  %v323_v24 = vld [vmem:[#allocation8 + $0xd8] sm:$0xff]  ;;  %v765_v25 = vpack.c.bf16 %v318_v22, %v316_v21  ;;  %v320_v27 = vld [vmem:[#allocation8 + $0xc0] sm:$0xff]  ;;  %v322_v28 = vld [vmem:[#allocation8 + $0xd0] sm:$0xff] }
  0x70   :  { %700 = vmatprep.subr.bf16.mxu0 %v699_v34  ;;  %v325_v29 = vld [vmem:[#allocation8 + $0xe8] sm:$0xff]  ;;  %v327_v30 = vld [vmem:[#allocation8 + $0xf8] sm:$0xff]  ;;  %v769_v31 = vpack.c.bf16 %v322_v28, %v320_v27  ;;  %v324_v33 = vld [vmem:[#allocation8 + $0xe0] sm:$0xff] }
  0x71   :  { %v771_v32 = vpack.c.bf16 %v327_v30, %v325_v29  ;;  %v326_v34 = vld [vmem:[#allocation8 + $0xf0] sm:$0xff]  ;;  %v1119_v36 = vld [vmem:[#allocation2] sm:$0xff]  ;;  %v1123_v37 = vld [vmem:[#allocation2 + $0x8] sm:$0xff] }
  0x72   :  { %v773_v35 = vpack.c.bf16 %v326_v34, %v324_v33  ;;  %v98_v38 = vld [vmem:[#allocation7 + $0x10] sm:$0xff]  ;;  %v107_v42 = vld [vmem:[#allocation7 + $0x58] sm:$0xff]  ;;  %v116_v47 = vld [vmem:[#allocation7 + $0xa0] sm:$0xff] }
  0x73   :  { %702 = vmatpush1.bf16.msra.mxu0 %v701_v39  ;;  %v101_v39 = vld [vmem:[#allocation7 + $0x28] sm:$0xff]  ;;  %v110_v44 = vld [vmem:[#allocation7 + $0x70] sm:$0xff]  ;;  %v119_v48 = vld [vmem:[#allocation7 + $0xb8] sm:$0xff] }
  0x74   :  { %704 = vmatprep.subr.bf16.mxu0 %v703_v40  ;;  %v104_v40 = vld [vmem:[#allocation7 + $0x40] sm:$0xff]  ;;  %v711_v41 = vpack.c.bf16 %v101_v39, %v98_v38  ;;  %v122_v49 = vld [vmem:[#allocation7 + $0xd0] sm:$0xff]  ;;  %v125_v50 = vld [vmem:[#allocation7 + $0xe8] sm:$0xff] }
  0x75   :  { %v715_v43 = vpack.c.bf16 %v107_v42, %v104_v40  ;;  %v131_v53 = vld [vmem:[#allocation7 + $0x118] sm:$0xff]  ;;  %v134_v55 = vld [vmem:[#allocation7 + $0x130] sm:$0xff]  ;;  %v137_v56 = vld [vmem:[#allocation7 + $0x148] sm:$0xff] }
  0x76   :  { %712 = vmatprep.subr.bf16.mxu1 %v711_v41  ;;  %v143_v59 = vld [vmem:[#allocation7 + $0x178] sm:$0xff]  ;;  %v444_v61 = vld [vmem:[#allocation10] sm:$0xff]  ;;  %v445_v62 = vld [vmem:[#allocation10 + $0x8] sm:$0xff] }
  0x77   :  { %706 = vmatpush1.bf16.msra.mxu0 %v705_v45  ;;  %v113_v45 = vld [vmem:[#allocation7 + $0x88] sm:$0xff]  ;;  %714 = vmatpush3.bf16.msra.mxu1 %v711_v41  ;;  %v447_v3 = vld [vmem:[#allocation10 + $0x18] sm:$0xff]  ;;  %v448_v5 = vld [vmem:[#allocation10 + $0x20] sm:$0xff] }
  0x78   :  { %708 = vmatprep.subr.bf16.mxu0 %v707_v46  ;;  %716 = vmatprep.subr.bf16.mxu1 %v715_v43  ;;  %v719_v46 = vpack.c.bf16 %v113_v45, %v110_v44  ;;  %v449_v6 = vld [vmem:[#allocation10 + $0x28] sm:$0xff]  ;;  %v451_v9 = vld [vmem:[#allocation10 + $0x38] sm:$0xff]  ;;  %v452_v11 = vld [vmem:[#allocation10 + $0x40] sm:$0xff] }
  0x79   :  { %v453_v12 = vld [vmem:[#allocation10 + $0x48] sm:$0xff]  ;;  %v456_v16 = vld [vmem:[#allocation10 + $0x60] sm:$0xff]  ;;  %v458_v18 = vld [vmem:[#allocation10 + $0x70] sm:$0xff] }
  0x7a   :  { %v457_v17 = vld [vmem:[#allocation10 + $0x68] sm:$0xff] }
  0x7b   :  { %710 = vmatpush1.bf16.msra.mxu0 %v709_v51  ;;  %718 = vmatpush3.bf16.msra.mxu1 %v715_v43  ;;  %v727_v51 = vpack.c.bf16 %v125_v50, %v122_v49 }
  0x7c   :  { %744 = vmatprep.subr.bf16.mxu0 %v743_v52  ;;  %720 = vmatprep.subr.bf16.mxu1 %v719_v46  ;;  %v128_v52 = vld [vmem:[#allocation7 + $0x100] sm:$0xff] }
  0x7d   :  { %v731_v54 = vpack.c.bf16 %v131_v53, %v128_v52 }
  0x7e   :  { %209 = vmatmul.mubr.f32.vlgmr.msra.gmra.mrb[0].mxu0 %v94_v26  ;;  %v767_v26 = vpack.c.bf16 %v323_v24, %v321_v23 }
  0x7f   :  { %746 = vmatpush1.bf16.msra.mxu0 %v745_v57  ;;  %214 = vmatprep.mubr.f32.mxu0 %v993_v0  ;;  %v735_v57 = vpack.c.bf16 %v137_v56, %v134_v55 }
  0x80   :  { %748 = vmatprep.subr.bf16.mxu0 %v747_v58  ;;  %722 = vmatpush3.bf16.msra.mxu1 %v719_v46  ;;  %v140_v58 = vld [vmem:[#allocation7 + $0x160] sm:$0xff] }
  0x81   :  { %v739_v60 = vpack.c.bf16 %v143_v59, %v140_v58 }
  0x82   :  { %215 = vmatmul.mubr.f32.gmra.mrb[2].mxu0 %v1115_v1 }
  0x83   :  { %750 = vmatpush1.bf16.msra.mxu0 %v749_v63  ;;  %392 = vmatprep.mubr.f32.mxu0 %v993_v0  ;;  %v775_v63 = vpack.c.bf16 %v445_v62, %v444_v61 }
  0x84   :  { %752 = vmatprep.subr.bf16.mxu0 %v751_v2  ;;  %v446_v2 = vld [vmem:[#allocation10 + $0x10] sm:$0xff] }
  0x85   :  { %v779_v4 = vpack.c.bf16 %v447_v3, %v446_v2 }
  0x87   :  { %754 = vmatpush1.bf16.msra.mxu0 %v753_v7  ;;  %v783_v7 = vpack.c.bf16 %v449_v6, %v448_v5 }
  0x88   :  { %756 = vmatprep.subr.bf16.mxu0 %v755_v8  ;;  %v450_v8 = vld [vmem:[#allocation10 + $0x30] sm:$0xff] }
  0x89   :  { %v787_v10 = vpack.c.bf16 %v451_v9, %v450_v8 }
  0x8b   :  { %758 = vmatpush1.bf16.msra.mxu0 %v757_v13  ;;  %v791_v13 = vpack.c.bf16 %v453_v12, %v452_v11 }
  0x8c   :  { %760 = vmatprep.subr.bf16.mxu0 %v759_v14  ;;  %v455_v14 = vld [vmem:[#allocation10 + $0x58] sm:$0xff] }
  0x8f   :  { %762 = vmatpush1.bf16.msra.mxu0 %v761_v19  ;;  %v799_v19 = vpack.c.bf16 %v457_v17, %v456_v16 }
  0x90   :  { %764 = vmatprep.subr.bf16.mxu0 %v763_v20  ;;  %v459_v20 = vld [vmem:[#allocation10 + $0x78] sm:$0xff] }
  0x91   :  { %v803_v21 = vpack.c.bf16 %v459_v20, %v458_v18 }
  0x93   :  { %766 = vmatpush1.bf16.msra.mxu0 %v765_v25 }
  0x94   :  { %768 = vmatprep.subr.bf16.mxu0 %v767_v26  ;;  %v568_v26 = vld [vmem:[%s1152_s3] ss:$0 sm:$0xff]  ;;  %s994_s3 = smov [#allocation11]  }
  0x95   :  { %s554_s14 = sshll.u32 %s994_s3, 4  ;;  %s555_s14 = int_to_ptr.vmem [resolvable:$true] %s554_s14 }
  0x96   :  { %s952_s15 = scalar_lea.vmem %s555_s14, 256  ;;  %p957_p13 = scmp.lt.s32.totalorder %s555_s14, %s555_s14 }
  0x97   :  { %770 = vmatpush1.bf16.msra.mxu0 %v769_v31  ;;  %p953_p12 = scmp.ne.s32.totalorder %s555_s14, %s952_s15  ;;  %p958_p0 = scmp.lt.s32.totalorder %s952_s15, %s952_s15 }
  0x98   :  { %772 = vmatprep.subr.bf16.mxu0 %v771_v32 }
  0x99   :  { %p959_p1 = por %p958_p0, %p957_p13 }
  0x9b   :  { %774 = vmatpush1.bf16.msra.mxu0 %v773_v35  ;;  %p960_p2 = pnand %p959_p1, %p953_p12 }
  0x9e   :  { %393 = vmatmul.mubr.f32.vlgmr.msra.gmra.mrb[4].mxu0 %v1119_v36 }
  0x9f   :  { %398 = vmatprep.mubr.f32.mxu0 %v993_v0  ;;  %v723_v0 = vpack.c.bf16 %v119_v48, %v116_v47 }
  0xa1   :  { %724 = vmatprep.subr.bf16.mxu1 %v723_v0 }
  0xa2   :  { %399 = vmatmul.mubr.f32.gmra.mrb[6].mxu0 %v1123_v37  ;;  %726 = vmatpush3.bf16.msra.mxu1 %v723_v0 }
  0xa3   :  { %728 = vmatprep.subr.bf16.mxu1 %v727_v51 }
  0xa6   :  { %730 = vmatpush3.bf16.msra.mxu1 %v727_v51 }
  0xa7   :  { %732 = vmatprep.subr.bf16.mxu1 %v731_v54 }
  0xaa   :  { %734 = vmatpush3.bf16.msra.mxu1 %v731_v54 }
  0xab   :  { %736 = vmatprep.subr.bf16.mxu1 %v735_v57 }
  0xae   :  { %738 = vmatpush3.bf16.msra.mxu1 %v735_v57 }
  0xaf   :  { %740 = vmatprep.subr.bf16.mxu1 %v739_v60 }
  0xb2   :  { %742 = vmatpush3.bf16.msra.mxu1 %v739_v60 }
  0xb3   :  { %776 = vmatprep.subr.bf16.mxu1 %v775_v63 }
  0xb5   :  { %642 = vmatmul.mubr.f32.vlgmr.msra.gmra.mrb[0].mxu1 %v1115_v1  ;;  %v454_v1 = vld [vmem:[#allocation10 + $0x50] sm:$0xff] }
  0xb6   :  { %778 = vmatpush3.bf16.msra.mxu1 %v775_v63  ;;  %v795_v15 = vpack.c.bf16 %v455_v14, %v454_v1 }
  0xb7   :  { %780 = vmatprep.subr.bf16.mxu1 %v779_v4 }
  0xba   :  { %782 = vmatpush3.bf16.msra.mxu1 %v779_v4 }
  0xbb   :  { %784 = vmatprep.subr.bf16.mxu1 %v783_v7 }
  0xbe   :  { %786 = vmatpush3.bf16.msra.mxu1 %v783_v7 }
  0xbf   :  { %788 = vmatprep.subr.bf16.mxu1 %v787_v10 }
  0xc2   :  { %790 = vmatpush3.bf16.msra.mxu1 %v787_v10 }
  0xc3   :  { %792 = vmatprep.subr.bf16.mxu1 %v791_v13 }
  0xc6   :  { %794 = vmatpush3.bf16.msra.mxu1 %v791_v13 }
  0xc7   :  { %796 = vmatprep.subr.bf16.mxu1 %v795_v15 }
  0xca   :  { %798 = vmatpush3.bf16.msra.mxu1 %v795_v15 }
  0xcb   :  { %800 = vmatprep.subr.bf16.mxu1 %v799_v19 }
  0xce   :  { %802 = vmatpush3.bf16.msra.mxu1 %v799_v19 }
  0xcf   :  { %804 = vmatprep.subr.bf16.mxu1 %v803_v21 }
  0xd2   :  { %806 = vmatpush3.bf16.msra.mxu1 %v803_v21 }
 0x151   :  { %v210_v22 = vpop.f32.mrb[0].mxu0 }
 0x152   :  { %v212_v23 = vpop.f32.mrb[1].mxu0  ;;  %v412_v27 = vadd.f32 %v568_v26, %v210_v22 }
 0x155   :  { %v216_v24 = vpop.f32.mrb[2].mxu0 }
 0x156   :  { %v218_v25 = vpop.f32.mrb[3].mxu0  ;;  %v413_v32 = vadd.f32 %v568_v26, %v216_v24 }
 0x171   :  { %v394_v28 = vpop.f32.mrb[4].mxu0 }
 0x172   :  { %v414_v29 = vadd.f32 %v412_v27, %v394_v28  ;;  %v396_v30 = vpop.f32.mrb[5].mxu0 }
 0x173   :  { %v428_v31 = vadd.f32 %v396_v30, %v212_v23 }
 0x174   :  { %v569_v49 = vmul.f32 -1.442695, %v414_v29 }
 0x175   :  { %v571_v33 = vmul.f32 -1.442695, %v428_v31  ;;  %v400_v34 = vpop.f32.mrb[6].mxu0 }
 0x176   :  { %v415_v35 = vadd.f32 %v413_v32, %v400_v34  ;;  %v402_v38 = vpop.f32.mrb[7].mxu0 }
 0x177   :  { %822 = vpow2.f32 %v571_v33  ;;  %v429_v39 = vadd.f32 %v402_v38, %v218_v25 }
 0x178   :  { %v570_v0 = vmul.f32 -1.442695, %v415_v35 }
 0x179   :  { %v572_v40 = vmul.f32 -1.442695, %v429_v39 }
 0x17b   :  { %824 = vpow2.f32 %v572_v40 }
 0x181   :  { %v823_v41 = vpop.eup %822 }
 0x182   :  { %v436_v42 = vadd.f32 1.0, %v823_v41 }
 0x184   :  { %826 = vrcp.f32 %v436_v42 }
 0x185   :  { %v825_v43 = vpop.eup %824 }
 0x186   :  { %v437_v44 = vadd.f32 1.0, %v825_v43 }
 0x188   :  { %828 = vrcp.f32 %v437_v44 }
 0x189   :  { %830 = vpow2.f32 %v570_v0 }
 0x18a   :  { %832 = vpow2.f32 %v569_v49 }
 0x18e   :  { %v827_v45 = vpop.eup %826 }
 0x18f   :  { %v442_v46 = vmul.f32 %v827_v45, %v1119_v36 }
 0x191   :  { %676 = vmatprep.mubr.f32.mxu1 %v442_v46 }
 0x192   :  { %v829_v47 = vpop.eup %828 }
 0x193   :  { %v443_v48 = vmul.f32 %v829_v47, %v1123_v37  ;;  %v831_v50 = vpop.eup %830 }
 0x194   :  { %v833_v51 = vpop.eup %832  ;;  %v423_v52 = vadd.f32 1.0, %v831_v50 }
 0x195   :  { %677 = vmatmul.mubr.f32.vlgmr.msra.gmra.mrb[0].mxu1 %v443_v48  ;;  %v422_v53 = vadd.f32 1.0, %v833_v51 }
 0x196   :  { %834 = vrcp.f32 %v423_v52 }
 0x197   :  { %836 = vrcp.f32 %v422_v53 }
 0x1a0   :  { %v835_v56 = vpop.eup %834 }
 0x1a1   :  { %v837_v57 = vpop.eup %836  ;;  %v540_v58 = vsub.f32 1.0, %v835_v56 }
 0x1a2   :  { %v539_v59 = vsub.f32 1.0, %v837_v57 }
 0x1a3   :  { %v542_v62 = vmul.f32 %v540_v58, %v1123_v37 }
 0x1a4   :  { %v541_v2 = vmul.f32 %v539_v59, %v1119_v36 }
 0x268   :  { %v678_v54 = vpop.f32.mrb[0].mxu1 }
 0x269   :  { %838 = vtanh.f32 %v678_v54  ;;  %v526_v55 = vpop.f32.mrb[1].mxu1 }
 0x26a   :  { %840 = vtanh.f32 %v526_v55 }
 0x273   :  { %v839_v60 = vpop.eup %838 }
 0x274   :  { %v841_v61 = vpop.eup %840  ;;  %v544_v63 = vmul.f32 %v839_v60, %v835_v56 }
 0x275   :  { %v543_v3 = vmul.f32 %v841_v61, %v837_v57 }
 0x276   :  { %v546_v4 = vadd.f32 %v544_v63, %v542_v62 }
 0x277   :  { %v545_v5 = vadd.f32 %v543_v3, %v541_v2 }
 0x278   :  { %548 = vst [vmem:[#allocation11 + $0x8] sm:$0xff] %v546_v4 }
 0x279   :  { %547 = vst [vmem:[#allocation11] sm:$0xff] %v545_v5 }
 0x27a   :  { %963 = shalt.err (!%p960_p2)
}
 0x27b   :  { %s964_s18 = scalar_lea.hbm %s1155_s6, 256 }
 0x27c   :  { %p965_p3 = scmp.ne.s32.totalorder %s1155_s6, %s964_s18  ;;  %p968_p4 = scmp.lt.u32.totalorder %s964_s18, %s1155_s6 }
 0x27e   :  { %p970_p5 = pnand %p968_p4, %p965_p3 }
 0x280   :  { %973 = shalt.err (!%p970_p5)
}
 0x281   :  { %560 = dma.vmem_to_hbm [thread:$0]  %s555_s14, 256, %s1155_s6, [#allocation4], %s984_s9, %s984_s9, %s985_s10  }
 0x282   :  { %980 = dma.done.wait [#allocation4], 256  }
 0x283   :  { %981 = vsyncadd [#allocation4], 4294967040 }
 0x284   :  { %564 = vsyncpa [#allocation3], 1 }
 0x285   :  { %565 = vsyncpa [#allocation6], 1 }
 0x286   :  { %566 = vsyncpa [#allocation9], 1 }
 0x287   :  { %567 = vsyncpa [#allocation4], 1 }

</bundles_post_ra>
